<compile_context>
chip_gen: v5e
topology: v5e:2x2
jax: 0.10.0
libtpu: 0.0.40
codegen_flags: <defaults>
</compile_context>

<pallas_src>
import functools

import jax
import jax.numpy as jnp
from jax import lax
from jax.experimental import pallas as pl
from jax.experimental.pallas import tpu as pltpu


# ------------------------------- utilities -----------------------------------

def _round_up(x, m):
    return ((x + m - 1) // m) * m


def _pad_axis(x, axis, new_size):
    if x.shape[axis] == new_size:
        return x
    pad = [(0, 0)] * x.ndim
    pad[axis] = (0, new_size - x.shape[axis])
    return jnp.pad(x, pad)


def _pad_gate_cols(w, H, Hp):
    """Pad each of the 4 gate blocks ([i|f|g|o] along last axis) from H to Hp."""
    K = w.shape[0]
    w4 = w.reshape(K, 4, H)
    w4 = _pad_axis(w4, 2, Hp)
    return w4.reshape(K, 4 * Hp)


def _resident_spec(block_shape):
    """Resident operand (constant index_map): single-buffered to save VMEM."""
    idx_map = lambda *args: (0,) * len(block_shape)
    try:
        return pl.BlockSpec(block_shape, idx_map, pipeline_mode=pl.Buffered(1))
    except TypeError:  # older jax without pipeline_mode kwarg
        return pl.BlockSpec(block_shape, idx_map)


def _vmem_limit_bytes():
    """Generation-aware VMEM budget (v7x: 64 MiB/TC -> ~48 MiB; v5e/v6e: ~96 MiB)."""
    try:
        cap = pltpu.get_tpu_info().vmem_capacity_bytes
    except Exception:
        cap = 128 * 1024 * 1024
    return int(min(cap * 3 // 4, 100 * 1024 * 1024))


# ----------------------------- Pallas kernels ---------------------------------

def input_proj_kernel(x_ref, w_ref, b_ref, out_ref):
    """gates_in tile = x_tile @ W_ih + (b_ih + b_hh); bf16 inputs, f32 acc,
    bf16 output (largest HBM intermediate -> halved traffic)."""
    acc = jnp.dot(x_ref[...], w_ref[...], preferred_element_type=jnp.float32)
    out_ref[...] = (acc + b_ref[...]).astype(out_ref.dtype)


def lstm_head_kernel(gin_ref, whh_ref, wfc_ref, bfc_ref, w1_ref, b1_ref,
                     w2_ref, b2_ref, out_ref, h_ref, c_ref,
                     *, t_blk, t_real, mask_tail):
    """Blocked streamed LSTM recurrence + fused classifier head.

    grid = (T_pad // t_blk,), "arbitrary".  Per grid step:
      gin_ref : (t_blk, Bp, 4Hp) bf16 precomputed input projections (streamed)
      whh_ref : (Hp, 4Hp) bf16 resident hidden->gates weight
      head weights resident (bf16) / biases resident (f32)
      out_ref : (Bp, Cp) f32, written only at the last grid step
      h_ref/c_ref : (Bp, Hp) f32 VMEM scratch carry across grid steps
    PyTorch gate order i, f, g, o.  Padded gate lanes stay exactly 0 in h/c.
    """
    blk = pl.program_id(0)
    Hp = whh_ref.shape[0]

    @pl.when(blk == 0)
    def _init():
        h_ref[...] = jnp.zeros_like(h_ref)
        c_ref[...] = jnp.zeros_like(c_ref)

    whh = whh_ref[...]  # hoist resident-weight load out of the unrolled loop

    def step(s, carry):
        h, c = carry
        gin = gin_ref[s].astype(jnp.float32)                    # (Bp, 4Hp)
        gates = gin + jnp.dot(h.astype(jnp.bfloat16), whh,
                              preferred_element_type=jnp.float32)
        i_g = jax.nn.sigmoid(gates[:, 0 * Hp:1 * Hp])
        f_g = jax.nn.sigmoid(gates[:, 1 * Hp:2 * Hp])
        g_g = jnp.tanh(gates[:, 2 * Hp:3 * Hp])
        o_g = jax.nn.sigmoid(gates[:, 3 * Hp:4 * Hp])
        c_new = f_g * c + i_g * g_g
        h_new = o_g * jnp.tanh(c_new)
        if mask_tail:  # static Python bool: only traced when T % t_blk != 0
            valid = (blk * t_blk + s) < t_real
            h_new = jnp.where(valid, h_new, h)
            c_new = jnp.where(valid, c_new, c)
        return h_new, c_new

    h_fin, c_fin = lax.fori_loop(0, t_blk, step, (h_ref[...], c_ref[...]),
                                 unroll=True)
    h_ref[...] = h_fin
    c_ref[...] = c_fin

    @pl.when(blk == pl.num_programs(0) - 1)
    def _head():
        # encoder_fc -> [Dropout=id] -> Linear -> ReLU -> [Dropout=id] -> Linear
        enc = jnp.dot(h_fin.astype(jnp.bfloat16), wfc_ref[...],
                      preferred_element_type=jnp.float32) + bfc_ref[...]
        hid = jnp.dot(enc.astype(jnp.bfloat16), w1_ref[...],
                      preferred_element_type=jnp.float32) + b1_ref[...]
        hid = jnp.maximum(hid, 0.0)
        out_ref[...] = jnp.dot(hid.astype(jnp.bfloat16), w2_ref[...],
                               preferred_element_type=jnp.float32) + b2_ref[...]


# -------------------------------- wrapper -------------------------------------

def emotion_classifier_forward(input_ids, params):
    """Full forward pass. input_ids: (B, T) int32 token ids."""
    emb_table = params["embedding"]                 # (V, E)
    B, T = input_ids.shape
    E = emb_table.shape[1]
    H = params["w_hh_t"].shape[0]
    L = params["w_fc_t"].shape[1]
    M = params["w1_t"].shape[1]
    C = params["w2_t"].shape[1]

    # Lane/sublane-aligned padded sizes.
    Bp = _round_up(B, 8)
    Hp = _round_up(H, 128)
    Lp = _round_up(L, 128)
    Mp = _round_up(M, 128)
    Cp = _round_up(C, 128)
    G4 = 4 * Hp

    # Timestep blocking for the recurrence.
    t_blk = min(16, T)
    T_pad = _round_up(T, t_blk)
    mask_tail = (T_pad != T)

    # Zero-padded, bf16 matmul weights (zeros keep real lanes exact); biases f32.
    w_ih_p = _pad_gate_cols(params["w_ih_t"], H, Hp).astype(jnp.bfloat16)      # (E, 4Hp)
    b_gates_p = _pad_gate_cols(params["b_gates"], H, Hp)                       # (1, 4Hp) f32
    w_hh_p = _pad_gate_cols(_pad_axis(params["w_hh_t"], 0, Hp),
                            H, Hp).astype(jnp.bfloat16)                        # (Hp, 4Hp)
    w_fc_p = _pad_axis(_pad_axis(params["w_fc_t"], 0, Hp), 1, Lp).astype(jnp.bfloat16)
    b_fc_p = _pad_axis(params["b_fc"], 1, Lp)                                  # f32
    w1_p = _pad_axis(_pad_axis(params["w1_t"], 0, Lp), 1, Mp).astype(jnp.bfloat16)
    b1_p = _pad_axis(params["b1"], 1, Mp)                                      # f32
    w2_p = _pad_axis(_pad_axis(params["w2_t"], 0, Mp), 1, Cp).astype(jnp.bfloat16)
    b2_p = _pad_axis(params["b2"], 1, Cp)                                      # f32

    # Time-major embedding gather (index with the tiny transposed id matrix so
    # the big activation tensor never needs a transpose), bf16 activations.
    # TODO(synk): fold the gather into phase 1 via scalar-prefetched ids.
    ids_p = jnp.pad(input_ids, ((0, Bp - B), (0, 0)))                          # (Bp, T)
    emb_bf = emb_table.astype(jnp.bfloat16)
    embedded_tm = jnp.take(emb_bf, ids_p.T, axis=0)                            # (T, Bp, E)
    embedded_tm = _pad_axis(embedded_tm, 0, T_pad)                             # (T_pad, Bp, E)

    vmem_limit = _vmem_limit_bytes()

    # --- Phase 1: hoisted input projection (all timesteps, fixed 256-row tile) ---
    rows = T_pad * Bp                                  # multiple of 8
    row_tile = min(256, rows)
    rows_p = _round_up(rows, row_tile)
    x2d = _pad_axis(embedded_tm.reshape(rows, E), 0, rows_p)

    cost1 = pl.CostEstimate(
        flops=2 * rows_p * E * G4,
        transcendentals=0,
        bytes_accessed=rows_p * E * 2 + E * G4 * 2 + G4 * 4 + rows_p * G4 * 2)

    gates2d = pl.pallas_call(
        input_proj_kernel,
        out_shape=jax.ShapeDtypeStruct((rows_p, G4), jnp.bfloat16),
        grid_spec=pltpu.PrefetchScalarGridSpec(
            num_scalar_prefetch=0,
            grid=(rows_p // row_tile,),
            in_specs=[
                pl.BlockSpec((row_tile, E), lambda i: (i, 0)),   # streamed rows
                _resident_spec((E, G4)),                         # W_ih resident
                _resident_spec((1, G4)),                         # bias resident
            ],
            out_specs=pl.BlockSpec((row_tile, G4), lambda i: (i, 0)),
        ),
        compiler_params=pltpu.CompilerParams(
            dimension_semantics=("parallel",),
            vmem_limit_bytes=vmem_limit),
        cost_estimate=cost1,
    )(x2d, w_ih_p, b_gates_p)
    gates_in = gates2d[:rows].reshape(T_pad, Bp, G4)             # bf16 intermediate

    # --- Phase 2: blocked streamed recurrence + fused classifier head ------------
    head_flops = 2 * Bp * (Hp * Lp + Lp * Mp + Mp * Cp)
    cost2 = pl.CostEstimate(
        flops=2 * T_pad * Bp * Hp * G4 + head_flops,
        transcendentals=T_pad * Bp * 5 * Hp,
        bytes_accessed=(T_pad * Bp * G4 * 2
                        + (Hp * G4 + Hp * Lp + Lp * Mp + Mp * Cp) * 2
                        + (G4 + Lp + Mp + Cp) * 4
                        + Bp * Cp * 4))

    kernel = functools.partial(lstm_head_kernel, t_blk=t_blk, t_real=T,
                               mask_tail=mask_tail)
    # TODO(synk): batch-parallel grid axis (v7x megacore) once B >= 16; move the
    # head into a separate tiny call if VMEM gets tight at large latent dims.
    logits_p = pl.pallas_call(
        kernel,
        out_shape=jax.ShapeDtypeStruct((Bp, Cp), jnp.float32),
        grid_spec=pltpu.PrefetchScalarGridSpec(
            num_scalar_prefetch=0,
            grid=(T_pad // t_blk,),
            in_specs=[
                pl.BlockSpec((t_blk, Bp, G4), lambda i: (i, 0, 0)),  # streamed gates
                _resident_spec((Hp, G4)),     # W_hh
                _resident_spec((Hp, Lp)),     # encoder_fc W
                _resident_spec((1, Lp)),      # encoder_fc b
                _resident_spec((Lp, Mp)),     # classifier W1
                _resident_spec((1, Mp)),      # classifier b1
                _resident_spec((Mp, Cp)),     # classifier W2
                _resident_spec((1, Cp)),      # classifier b2
            ],
            out_specs=pl.BlockSpec((Bp, Cp), lambda i: (0, 0)),      # resident out
            scratch_shapes=[pltpu.VMEM((Bp, Hp), jnp.float32),       # h carry
                            pltpu.VMEM((Bp, Hp), jnp.float32)],      # c carry
        ),
        compiler_params=pltpu.CompilerParams(
            dimension_semantics=("arbitrary",),
            vmem_limit_bytes=vmem_limit),
        cost_estimate=cost2,
    )(gates_in, w_hh_p, w_fc_p, b_fc_p, w1_p, b1_p, w2_p, b2_p)

    return logits_p[:B, :C]


# Pure-JAX f32 reference (mirrors PyTorch semantics) for a correctness check.
def reference_forward(input_ids, params):
    emb = jnp.take(params["embedding"], input_ids, axis=0)    # (B, T, E)
    B, T, E = emb.shape
    H = params["w_hh_t"].shape[0]
    h = jnp.zeros((B, H), jnp.float32)
    c = jnp.zeros((B, H), jnp.float32)
    for t in range(T):
        gates = emb[:, t, :] @ params["w_ih_t"] + h @ params["w_hh_t"] + params["b_gates"]
        i_g = jax.nn.sigmoid(gates[:, 0 * H:1 * H])
        f_g = jax.nn.sigmoid(gates[:, 1 * H:2 * H])
        g_g = jnp.tanh(gates[:, 2 * H:3 * H])
        o_g = jax.nn.sigmoid(gates[:, 3 * H:4 * H])
        c = f_g * c + i_g * g_g
        h = o_g * jnp.tanh(c)
    enc = h @ params["w_fc_t"] + params["b_fc"]
    hid = jnp.maximum(enc @ params["w1_t"] + params["b1"], 0.0)
    return hid @ params["w2_t"] + params["b2"]


# ------------------------------- param init -----------------------------------

def init_params(key, vocab_size, embed_dim, hidden_dim, latent_dim, num_classes):
    ks = jax.random.split(key, 10)
    s = 0.1
    return {
        # nn.Embedding(vocab_size, embed_dim)
        "embedding": s * jax.random.normal(ks[0], (vocab_size, embed_dim), jnp.float32),
        # nn.LSTM(embed_dim, hidden_dim, batch_first=True) — weights pre-transposed
        "w_ih_t": s * jax.random.normal(ks[1], (embed_dim, 4 * hidden_dim), jnp.float32),
        "w_hh_t": s * jax.random.normal(ks[2], (hidden_dim, 4 * hidden_dim), jnp.float32),
        # combined b_ih + b_hh, kept 2D for TPU-friendly broadcast
        "b_gates": s * jax.random.normal(ks[3], (1, 4 * hidden_dim), jnp.float32),
        # encoder_fc: nn.Linear(hidden_dim, latent_dim)
        "w_fc_t": s * jax.random.normal(ks[4], (hidden_dim, latent_dim), jnp.float32),
        "b_fc": s * jax.random.normal(ks[5], (1, latent_dim), jnp.float32),
        # classifier Linear(latent_dim, latent_dim // 2)
        "w1_t": s * jax.random.normal(ks[6], (latent_dim, latent_dim // 2), jnp.float32),
        "b1": s * jax.random.normal(ks[7], (1, latent_dim // 2), jnp.float32),
        # classifier Linear(latent_dim // 2, num_classes)
        "w2_t": s * jax.random.normal(ks[8], (latent_dim // 2, num_classes), jnp.float32),
        "b2": s * jax.random.normal(ks[9], (1, num_classes), jnp.float32),
    }


if __name__ == "__main__":
    B, T = 2, 8
    vocab_size, embed_dim, hidden_dim, latent_dim, num_classes = 100, 32, 64, 32, 2

    key = jax.random.PRNGKey(0)
    k_params, k_ids = jax.random.split(key)
    params = init_params(k_params, vocab_size, embed_dim, hidden_dim,
                         latent_dim, num_classes)
    input_ids = jax.random.randint(k_ids, (B, T), 0, vocab_size, dtype=jnp.int32)

    fwd = jax.jit(emotion_classifier_forward)
    logits = jax.block_until_ready(fwd(input_ids, params))

    ref = reference_forward(input_ids, params)
    assert logits.shape == (B, num_classes)
    max_err = float(jnp.max(jnp.abs(logits - ref)))
    # bf16 matmul inputs -> relaxed tolerance vs the pure-f32 reference.
    assert jnp.allclose(logits, ref, atol=2e-2, rtol=2e-2), \
        f"mismatch vs reference (max abs err {max_err})"

    print("KERNEL_OK")
</pallas_src>

<mosaic_0001>
module attributes {stable_mosaic.version = 11 : i64} {
  func.func @input_proj_kernel(%arg0: i32, %arg1: memref<64x32xbf16, #tpu.memory_space<vmem>>, %arg2: memref<32x512xbf16, #tpu.memory_space<vmem>>, %arg3: memref<1x512xf32, #tpu.memory_space<vmem>>, %arg4: memref<64x512xbf16, #tpu.memory_space<vmem>>) attributes {dimension_semantics = [#tpu.dimension_semantics<parallel>], iteration_bounds = array<i64: 1>, scalar_prefetch = 0 : i64, scratch_operands = 0 : i64, tpu.core_type = #tpu.core_type<tc>, window_params = [{transform_indices = @transform_0, window_bounds = array<i64: 64, 32>}, {pipeline_mode = #tpu.pipeline_mode<synchronous>, transform_indices = @transform_1, window_bounds = array<i64: 32, 512>}, {pipeline_mode = #tpu.pipeline_mode<synchronous>, transform_indices = @transform_2, window_bounds = array<i64: 1, 512>}, {transform_indices = @transform_3, window_bounds = array<i64: 64, 512>}]} {
    %c0 = arith.constant 0 : index
    %c0_0 = arith.constant 0 : index
    %0 = vector.load %arg1[%c0, %c0_0] : memref<64x32xbf16, #tpu.memory_space<vmem>>, vector<64x32xbf16>
    %c0_1 = arith.constant 0 : index
    %c0_2 = arith.constant 0 : index
    %1 = vector.load %arg2[%c0_1, %c0_2] : memref<32x512xbf16, #tpu.memory_space<vmem>>, vector<32x512xbf16>
    %cst = arith.constant dense<0.000000e+00> : vector<64x512xf32>
    %2 = tpu.matmul %0, %1, %cst {dimension_numbers = #tpu.dot_dimension_numbers<[1], [0], [0], [1], [0, 0, 1, 1], [], []>} : vector<64x32xbf16>, vector<32x512xbf16>, vector<64x512xf32> -> vector<64x512xf32>
    %c0_3 = arith.constant 0 : index
    %c0_4 = arith.constant 0 : index
    %3 = vector.load %arg3[%c0_3, %c0_4] : memref<1x512xf32, #tpu.memory_space<vmem>>, vector<1x512xf32>
    %4 = vector.broadcast %3 : vector<1x512xf32> to vector<64x512xf32>
    %5 = arith.addf %2, %4 : vector<64x512xf32>
    %6 = arith.truncf %5 : vector<64x512xf32> to vector<64x512xbf16>
    %c0_5 = arith.constant 0 : index
    %c0_6 = arith.constant 0 : index
    %7 = vector.load %arg4[%c0_5, %c0_6] : memref<64x512xbf16, #tpu.memory_space<vmem>>, vector<64x512xbf16>
    tpu.vector_store %arg4[%c0_5, %c0_6], %6 {strides = array<i32>} : memref<64x512xbf16, #tpu.memory_space<vmem>>, vector<64x512xbf16>,
    return
  }
  func.func @transform_0(%arg0: i32) -> (i32, i32) {
    %c0_i32 = arith.constant 0 : i32
    %c0_i32_0 = arith.constant 0 : i32
    return %arg0, %c0_i32 : i32, i32
  }
  func.func @transform_1(%arg0: i32) -> (i32, i32) {
    %c0_i32 = arith.constant 0 : i32
    %c0_i32_0 = arith.constant 0 : i32
    %c0_i32_1 = arith.constant 0 : i32
    return %c0_i32, %c0_i32_0 : i32, i32
  }
  func.func @transform_2(%arg0: i32) -> (i32, i32) {
    %c0_i32 = arith.constant 0 : i32
    %c0_i32_0 = arith.constant 0 : i32
    %c0_i32_1 = arith.constant 0 : i32
    return %c0_i32, %c0_i32_0 : i32, i32
  }
  func.func @transform_3(%arg0: i32) -> (i32, i32) {
    %c0_i32 = arith.constant 0 : i32
    %c0_i32_0 = arith.constant 0 : i32
    return %arg0, %c0_i32 : i32, i32
  }
}

module attributes {stable_mosaic.version = 11 : i64} {
  func.func @lstm_head_kernel(%arg0: i32, %arg1: memref<8x8x512xbf16, #tpu.memory_space<vmem>>, %arg2: memref<128x512xbf16, #tpu.memory_space<vmem>>, %arg3: memref<128x128xbf16, #tpu.memory_space<vmem>>, %arg4: memref<1x128xf32, #tpu.memory_space<vmem>>, %arg5: memref<128x128xbf16, #tpu.memory_space<vmem>>, %arg6: memref<1x128xf32, #tpu.memory_space<vmem>>, %arg7: memref<128x128xbf16, #tpu.memory_space<vmem>>, %arg8: memref<1x128xf32, #tpu.memory_space<vmem>>, %arg9: memref<8x128xf32, #tpu.memory_space<vmem>>, %arg10: memref<8x128xf32, #tpu.memory_space<vmem>>, %arg11: memref<8x128xf32, #tpu.memory_space<vmem>>) attributes {dimension_semantics = [#tpu.dimension_semantics<arbitrary>], iteration_bounds = array<i64: 1>, scalar_prefetch = 0 : i64, scratch_operands = 2 : i64, tpu.core_type = #tpu.core_type<tc>, window_params = [{transform_indices = @transform_0, window_bounds = array<i64: 8, 8, 512>}, {pipeline_mode = #tpu.pipeline_mode<synchronous>, transform_indices = @transform_1, window_bounds = array<i64: 128, 512>}, {pipeline_mode = #tpu.pipeline_mode<synchronous>, transform_indices = @transform_2, window_bounds = array<i64: 128, 128>}, {pipeline_mode = #tpu.pipeline_mode<synchronous>, transform_indices = @transform_3, window_bounds = array<i64: 1, 128>}, {pipeline_mode = #tpu.pipeline_mode<synchronous>, transform_indices = @transform_4, window_bounds = array<i64: 128, 128>}, {pipeline_mode = #tpu.pipeline_mode<synchronous>, transform_indices = @transform_5, window_bounds = array<i64: 1, 128>}, {pipeline_mode = #tpu.pipeline_mode<synchronous>, transform_indices = @transform_6, window_bounds = array<i64: 128, 128>}, {pipeline_mode = #tpu.pipeline_mode<synchronous>, transform_indices = @transform_7, window_bounds = array<i64: 1, 128>}, {pipeline_mode = #tpu.pipeline_mode<synchronous>, transform_indices = @transform_8, window_bounds = array<i64: 8, 128>}]} {
    %c0_i32 = arith.constant 0 : i32
    %0 = arith.cmpi eq, %arg0, %c0_i32 : i32
    %1 = arith.extui %0 : i1 to i32
    %c0_i32_0 = arith.constant 0 : i32
    %2 = arith.cmpi ne, %1, %c0_i32_0 : i32
    scf.if %2 {
      %cst_60 = arith.constant 0.000000e+00 : f32
      %267 = vector.broadcast %cst_60 : f32 to vector<8x128xf32>
      %c0_61 = arith.constant 0 : index
      %c0_62 = arith.constant 0 : index
      %268 = vector.load %arg10[%c0_61, %c0_62] : memref<8x128xf32, #tpu.memory_space<vmem>>, vector<8x128xf32>
      tpu.vector_store %arg10[%c0_61, %c0_62], %267 {strides = array<i32>} : memref<8x128xf32, #tpu.memory_space<vmem>>, vector<8x128xf32>,
      %cst_63 = arith.constant 0.000000e+00 : f32
      %269 = vector.broadcast %cst_63 : f32 to vector<8x128xf32>
      %c0_64 = arith.constant 0 : index
      %c0_65 = arith.constant 0 : index
      %270 = vector.load %arg11[%c0_64, %c0_65] : memref<8x128xf32, #tpu.memory_space<vmem>>, vector<8x128xf32>
      tpu.vector_store %arg11[%c0_64, %c0_65], %269 {strides = array<i32>} : memref<8x128xf32, #tpu.memory_space<vmem>>, vector<8x128xf32>,
    } else {
    }
    %c0 = arith.constant 0 : index
    %c0_1 = arith.constant 0 : index
    %3 = vector.load %arg2[%c0, %c0_1] : memref<128x512xbf16, #tpu.memory_space<vmem>>, vector<128x512xbf16>
    %c0_2 = arith.constant 0 : index
    %c0_3 = arith.constant 0 : index
    %4 = vector.load %arg10[%c0_2, %c0_3] : memref<8x128xf32, #tpu.memory_space<vmem>>, vector<8x128xf32>
    %c0_4 = arith.constant 0 : index
    %c0_5 = arith.constant 0 : index
    %5 = vector.load %arg11[%c0_4, %c0_5] : memref<8x128xf32, #tpu.memory_space<vmem>>, vector<8x128xf32>
    %c0_i32_6 = arith.constant 0 : i32
    %6 = arith.index_cast %c0_i32_6 : i32 to index
    %c0_7 = arith.constant 0 : index
    %c0_8 = arith.constant 0 : index
    %7 = vector.load %arg1[%6, %c0_7, %c0_8] : memref<8x8x512xbf16, #tpu.memory_space<vmem>>, vector<1x8x512xbf16>
    %8 = vector.shape_cast %7 : vector<1x8x512xbf16> to vector<8x512xbf16>
    %9 = arith.extf %8 : vector<8x512xbf16> to vector<8x512xf32>
    %10 = arith.truncf %4 : vector<8x128xf32> to vector<8x128xbf16>
    %cst = arith.constant dense<0.000000e+00> : vector<8x512xf32>
    %11 = tpu.matmul %10, %3, %cst {dimension_numbers = #tpu.dot_dimension_numbers<[1], [0], [0], [1], [0, 0, 1, 1], [], []>} : vector<8x128xbf16>, vector<128x512xbf16>, vector<8x512xf32> -> vector<8x512xf32>
    %12 = arith.addf %9, %11 : vector<8x512xf32>
    %13 = vector.extract_strided_slice %12 {offsets = [0, 0], sizes = [8, 128], strides = [1, 1]} : vector<8x512xf32> to vector<8x128xf32>
    %14 = arith.negf %13 : vector<8x128xf32>
    %15 = math.exp %14 : vector<8x128xf32>
    %cst_9 = arith.constant 1.000000e+00 : f32
    %16 = vector.broadcast %cst_9 : f32 to vector<8x128xf32>
    %17 = arith.addf %16, %15 : vector<8x128xf32>
    %18 = arith.divf %16, %17 : vector<8x128xf32>
    %19 = vector.extract_strided_slice %12 {offsets = [0, 128], sizes = [8, 128], strides = [1, 1]} : vector<8x512xf32> to vector<8x128xf32>
    %20 = arith.negf %19 : vector<8x128xf32>
    %21 = math.exp %20 : vector<8x128xf32>
    %cst_10 = arith.constant 1.000000e+00 : f32
    %22 = vector.broadcast %cst_10 : f32 to vector<8x128xf32>
    %23 = arith.addf %22, %21 : vector<8x128xf32>
    %24 = arith.divf %22, %23 : vector<8x128xf32>
    %25 = vector.extract_strided_slice %12 {offsets = [0, 256], sizes = [8, 128], strides = [1, 1]} : vector<8x512xf32> to vector<8x128xf32>
    %26 = math.tanh %25 : vector<8x128xf32>
    %27 = vector.extract_strided_slice %12 {offsets = [0, 384], sizes = [8, 128], strides = [1, 1]} : vector<8x512xf32> to vector<8x128xf32>
    %28 = arith.negf %27 : vector<8x128xf32>
    %29 = math.exp %28 : vector<8x128xf32>
    %cst_11 = arith.constant 1.000000e+00 : f32
    %30 = vector.broadcast %cst_11 : f32 to vector<8x128xf32>
    %31 = arith.addf %30, %29 : vector<8x128xf32>
    %32 = arith.divf %30, %31 : vector<8x128xf32>
    %33 = arith.mulf %24, %5 : vector<8x128xf32>
    %34 = arith.mulf %18, %26 : vector<8x128xf32>
    %35 = arith.addf %33, %34 : vector<8x128xf32>
    %36 = math.tanh %35 : vector<8x128xf32>
    %37 = arith.mulf %32, %36 : vector<8x128xf32>
    %c1_i32 = arith.constant 1 : i32
    %38 = arith.index_cast %c1_i32 : i32 to index
    %c0_12 = arith.constant 0 : index
    %c0_13 = arith.constant 0 : index
    %39 = vector.load %arg1[%38, %c0_12, %c0_13] : memref<8x8x512xbf16, #tpu.memory_space<vmem>>, vector<1x8x512xbf16>
    %40 = vector.shape_cast %39 : vector<1x8x512xbf16> to vector<8x512xbf16>
    %41 = arith.extf %40 : vector<8x512xbf16> to vector<8x512xf32>
    %42 = arith.truncf %37 : vector<8x128xf32> to vector<8x128xbf16>
    %cst_14 = arith.constant dense<0.000000e+00> : vector<8x512xf32>
    %43 = tpu.matmul %42, %3, %cst_14 {dimension_numbers = #tpu.dot_dimension_numbers<[1], [0], [0], [1], [0, 0, 1, 1], [], []>} : vector<8x128xbf16>, vector<128x512xbf16>, vector<8x512xf32> -> vector<8x512xf32>
    %44 = arith.addf %41, %43 : vector<8x512xf32>
    %45 = vector.extract_strided_slice %44 {offsets = [0, 0], sizes = [8, 128], strides = [1, 1]} : vector<8x512xf32> to vector<8x128xf32>
    %46 = arith.negf %45 : vector<8x128xf32>
    %47 = math.exp %46 : vector<8x128xf32>
    %cst_15 = arith.constant 1.000000e+00 : f32
    %48 = vector.broadcast %cst_15 : f32 to vector<8x128xf32>
    %49 = arith.addf %48, %47 : vector<8x128xf32>
    %50 = arith.divf %48, %49 : vector<8x128xf32>
    %51 = vector.extract_strided_slice %44 {offsets = [0, 128], sizes = [8, 128], strides = [1, 1]} : vector<8x512xf32> to vector<8x128xf32>
    %52 = arith.negf %51 : vector<8x128xf32>
    %53 = math.exp %52 : vector<8x128xf32>
    %cst_16 = arith.constant 1.000000e+00 : f32
    %54 = vector.broadcast %cst_16 : f32 to vector<8x128xf32>
    %55 = arith.addf %54, %53 : vector<8x128xf32>
    %56 = arith.divf %54, %55 : vector<8x128xf32>
    %57 = vector.extract_strided_slice %44 {offsets = [0, 256], sizes = [8, 128], strides = [1, 1]} : vector<8x512xf32> to vector<8x128xf32>
    %58 = math.tanh %57 : vector<8x128xf32>
    %59 = vector.extract_strided_slice %44 {offsets = [0, 384], sizes = [8, 128], strides = [1, 1]} : vector<8x512xf32> to vector<8x128xf32>
    %60 = arith.negf %59 : vector<8x128xf32>
    %61 = math.exp %60 : vector<8x128xf32>
    %cst_17 = arith.constant 1.000000e+00 : f32
    %62 = vector.broadcast %cst_17 : f32 to vector<8x128xf32>
    %63 = arith.addf %62, %61 : vector<8x128xf32>
    %64 = arith.divf %62, %63 : vector<8x128xf32>
    %65 = arith.mulf %56, %35 : vector<8x128xf32>
    %66 = arith.mulf %50, %58 : vector<8x128xf32>
    %67 = arith.addf %65, %66 : vector<8x128xf32>
    %68 = math.tanh %67 : vector<8x128xf32>
    %69 = arith.mulf %64, %68 : vector<8x128xf32>
    %c2_i32 = arith.constant 2 : i32
    %70 = arith.index_cast %c2_i32 : i32 to index
    %c0_18 = arith.constant 0 : index
    %c0_19 = arith.constant 0 : index
    %71 = vector.load %arg1[%70, %c0_18, %c0_19] : memref<8x8x512xbf16, #tpu.memory_space<vmem>>, vector<1x8x512xbf16>
    %72 = vector.shape_cast %71 : vector<1x8x512xbf16> to vector<8x512xbf16>
    %73 = arith.extf %72 : vector<8x512xbf16> to vector<8x512xf32>
    %74 = arith.truncf %69 : vector<8x128xf32> to vector<8x128xbf16>
    %cst_20 = arith.constant dense<0.000000e+00> : vector<8x512xf32>
    %75 = tpu.matmul %74, %3, %cst_20 {dimension_numbers = #tpu.dot_dimension_numbers<[1], [0], [0], [1], [0, 0, 1, 1], [], []>} : vector<8x128xbf16>, vector<128x512xbf16>, vector<8x512xf32> -> vector<8x512xf32>
    %76 = arith.addf %73, %75 : vector<8x512xf32>
    %77 = vector.extract_strided_slice %76 {offsets = [0, 0], sizes = [8, 128], strides = [1, 1]} : vector<8x512xf32> to vector<8x128xf32>
    %78 = arith.negf %77 : vector<8x128xf32>
    %79 = math.exp %78 : vector<8x128xf32>
    %cst_21 = arith.constant 1.000000e+00 : f32
    %80 = vector.broadcast %cst_21 : f32 to vector<8x128xf32>
    %81 = arith.addf %80, %79 : vector<8x128xf32>
    %82 = arith.divf %80, %81 : vector<8x128xf32>
    %83 = vector.extract_strided_slice %76 {offsets = [0, 128], sizes = [8, 128], strides = [1, 1]} : vector<8x512xf32> to vector<8x128xf32>
    %84 = arith.negf %83 : vector<8x128xf32>
    %85 = math.exp %84 : vector<8x128xf32>
    %cst_22 = arith.constant 1.000000e+00 : f32
    %86 = vector.broadcast %cst_22 : f32 to vector<8x128xf32>
    %87 = arith.addf %86, %85 : vector<8x128xf32>
    %88 = arith.divf %86, %87 : vector<8x128xf32>
    %89 = vector.extract_strided_slice %76 {offsets = [0, 256], sizes = [8, 128], strides = [1, 1]} : vector<8x512xf32> to vector<8x128xf32>
    %90 = math.tanh %89 : vector<8x128xf32>
    %91 = vector.extract_strided_slice %76 {offsets = [0, 384], sizes = [8, 128], strides = [1, 1]} : vector<8x512xf32> to vector<8x128xf32>
    %92 = arith.negf %91 : vector<8x128xf32>
    %93 = math.exp %92 : vector<8x128xf32>
    %cst_23 = arith.constant 1.000000e+00 : f32
    %94 = vector.broadcast %cst_23 : f32 to vector<8x128xf32>
    %95 = arith.addf %94, %93 : vector<8x128xf32>
    %96 = arith.divf %94, %95 : vector<8x128xf32>
    %97 = arith.mulf %88, %67 : vector<8x128xf32>
    %98 = arith.mulf %82, %90 : vector<8x128xf32>
    %99 = arith.addf %97, %98 : vector<8x128xf32>
    %100 = math.tanh %99 : vector<8x128xf32>
    %101 = arith.mulf %96, %100 : vector<8x128xf32>
    %c3_i32 = arith.constant 3 : i32
    %102 = arith.index_cast %c3_i32 : i32 to index
    %c0_24 = arith.constant 0 : index
    %c0_25 = arith.constant 0 : index
    %103 = vector.load %arg1[%102, %c0_24, %c0_25] : memref<8x8x512xbf16, #tpu.memory_space<vmem>>, vector<1x8x512xbf16>
    %104 = vector.shape_cast %103 : vector<1x8x512xbf16> to vector<8x512xbf16>
    %105 = arith.extf %104 : vector<8x512xbf16> to vector<8x512xf32>
    %106 = arith.truncf %101 : vector<8x128xf32> to vector<8x128xbf16>
    %cst_26 = arith.constant dense<0.000000e+00> : vector<8x512xf32>
    %107 = tpu.matmul %106, %3, %cst_26 {dimension_numbers = #tpu.dot_dimension_numbers<[1], [0], [0], [1], [0, 0, 1, 1], [], []>} : vector<8x128xbf16>, vector<128x512xbf16>, vector<8x512xf32> -> vector<8x512xf32>
    %108 = arith.addf %105, %107 : vector<8x512xf32>
    %109 = vector.extract_strided_slice %108 {offsets = [0, 0], sizes = [8, 128], strides = [1, 1]} : vector<8x512xf32> to vector<8x128xf32>
    %110 = arith.negf %109 : vector<8x128xf32>
    %111 = math.exp %110 : vector<8x128xf32>
    %cst_27 = arith.constant 1.000000e+00 : f32
    %112 = vector.broadcast %cst_27 : f32 to vector<8x128xf32>
    %113 = arith.addf %112, %111 : vector<8x128xf32>
    %114 = arith.divf %112, %113 : vector<8x128xf32>
    %115 = vector.extract_strided_slice %108 {offsets = [0, 128], sizes = [8, 128], strides = [1, 1]} : vector<8x512xf32> to vector<8x128xf32>
    %116 = arith.negf %115 : vector<8x128xf32>
    %117 = math.exp %116 : vector<8x128xf32>
    %cst_28 = arith.constant 1.000000e+00 : f32
    %118 = vector.broadcast %cst_28 : f32 to vector<8x128xf32>
    %119 = arith.addf %118, %117 : vector<8x128xf32>
    %120 = arith.divf %118, %119 : vector<8x128xf32>
    %121 = vector.extract_strided_slice %108 {offsets = [0, 256], sizes = [8, 128], strides = [1, 1]} : vector<8x512xf32> to vector<8x128xf32>
    %122 = math.tanh %121 : vector<8x128xf32>
    %123 = vector.extract_strided_slice %108 {offsets = [0, 384], sizes = [8, 128], strides = [1, 1]} : vector<8x512xf32> to vector<8x128xf32>
    %124 = arith.negf %123 : vector<8x128xf32>
    %125 = math.exp %124 : vector<8x128xf32>
    %cst_29 = arith.constant 1.000000e+00 : f32
    %126 = vector.broadcast %cst_29 : f32 to vector<8x128xf32>
    %127 = arith.addf %126, %125 : vector<8x128xf32>
    %128 = arith.divf %126, %127 : vector<8x128xf32>
    %129 = arith.mulf %120, %99 : vector<8x128xf32>
    %130 = arith.mulf %114, %122 : vector<8x128xf32>
    %131 = arith.addf %129, %130 : vector<8x128xf32>
    %132 = math.tanh %131 : vector<8x128xf32>
    %133 = arith.mulf %128, %132 : vector<8x128xf32>
    %c4_i32 = arith.constant 4 : i32
    %134 = arith.index_cast %c4_i32 : i32 to index
    %c0_30 = arith.constant 0 : index
    %c0_31 = arith.constant 0 : index
    %135 = vector.load %arg1[%134, %c0_30, %c0_31] : memref<8x8x512xbf16, #tpu.memory_space<vmem>>, vector<1x8x512xbf16>
    %136 = vector.shape_cast %135 : vector<1x8x512xbf16> to vector<8x512xbf16>
    %137 = arith.extf %136 : vector<8x512xbf16> to vector<8x512xf32>
    %138 = arith.truncf %133 : vector<8x128xf32> to vector<8x128xbf16>
    %cst_32 = arith.constant dense<0.000000e+00> : vector<8x512xf32>
    %139 = tpu.matmul %138, %3, %cst_32 {dimension_numbers = #tpu.dot_dimension_numbers<[1], [0], [0], [1], [0, 0, 1, 1], [], []>} : vector<8x128xbf16>, vector<128x512xbf16>, vector<8x512xf32> -> vector<8x512xf32>
    %140 = arith.addf %137, %139 : vector<8x512xf32>
    %141 = vector.extract_strided_slice %140 {offsets = [0, 0], sizes = [8, 128], strides = [1, 1]} : vector<8x512xf32> to vector<8x128xf32>
    %142 = arith.negf %141 : vector<8x128xf32>
    %143 = math.exp %142 : vector<8x128xf32>
    %cst_33 = arith.constant 1.000000e+00 : f32
    %144 = vector.broadcast %cst_33 : f32 to vector<8x128xf32>
    %145 = arith.addf %144, %143 : vector<8x128xf32>
    %146 = arith.divf %144, %145 : vector<8x128xf32>
    %147 = vector.extract_strided_slice %140 {offsets = [0, 128], sizes = [8, 128], strides = [1, 1]} : vector<8x512xf32> to vector<8x128xf32>
    %148 = arith.negf %147 : vector<8x128xf32>
    %149 = math.exp %148 : vector<8x128xf32>
    %cst_34 = arith.constant 1.000000e+00 : f32
    %150 = vector.broadcast %cst_34 : f32 to vector<8x128xf32>
    %151 = arith.addf %150, %149 : vector<8x128xf32>
    %152 = arith.divf %150, %151 : vector<8x128xf32>
    %153 = vector.extract_strided_slice %140 {offsets = [0, 256], sizes = [8, 128], strides = [1, 1]} : vector<8x512xf32> to vector<8x128xf32>
    %154 = math.tanh %153 : vector<8x128xf32>
    %155 = vector.extract_strided_slice %140 {offsets = [0, 384], sizes = [8, 128], strides = [1, 1]} : vector<8x512xf32> to vector<8x128xf32>
    %156 = arith.negf %155 : vector<8x128xf32>
    %157 = math.exp %156 : vector<8x128xf32>
    %cst_35 = arith.constant 1.000000e+00 : f32
    %158 = vector.broadcast %cst_35 : f32 to vector<8x128xf32>
    %159 = arith.addf %158, %157 : vector<8x128xf32>
    %160 = arith.divf %158, %159 : vector<8x128xf32>
    %161 = arith.mulf %152, %131 : vector<8x128xf32>
    %162 = arith.mulf %146, %154 : vector<8x128xf32>
    %163 = arith.addf %161, %162 : vector<8x128xf32>
    %164 = math.tanh %163 : vector<8x128xf32>
    %165 = arith.mulf %160, %164 : vector<8x128xf32>
    %c5_i32 = arith.constant 5 : i32
    %166 = arith.index_cast %c5_i32 : i32 to index
    %c0_36 = arith.constant 0 : index
    %c0_37 = arith.constant 0 : index
    %167 = vector.load %arg1[%166, %c0_36, %c0_37] : memref<8x8x512xbf16, #tpu.memory_space<vmem>>, vector<1x8x512xbf16>
    %168 = vector.shape_cast %167 : vector<1x8x512xbf16> to vector<8x512xbf16>
    %169 = arith.extf %168 : vector<8x512xbf16> to vector<8x512xf32>
    %170 = arith.truncf %165 : vector<8x128xf32> to vector<8x128xbf16>
    %cst_38 = arith.constant dense<0.000000e+00> : vector<8x512xf32>
    %171 = tpu.matmul %170, %3, %cst_38 {dimension_numbers = #tpu.dot_dimension_numbers<[1], [0], [0], [1], [0, 0, 1, 1], [], []>} : vector<8x128xbf16>, vector<128x512xbf16>, vector<8x512xf32> -> vector<8x512xf32>
    %172 = arith.addf %169, %171 : vector<8x512xf32>
    %173 = vector.extract_strided_slice %172 {offsets = [0, 0], sizes = [8, 128], strides = [1, 1]} : vector<8x512xf32> to vector<8x128xf32>
    %174 = arith.negf %173 : vector<8x128xf32>
    %175 = math.exp %174 : vector<8x128xf32>
    %cst_39 = arith.constant 1.000000e+00 : f32
    %176 = vector.broadcast %cst_39 : f32 to vector<8x128xf32>
    %177 = arith.addf %176, %175 : vector<8x128xf32>
    %178 = arith.divf %176, %177 : vector<8x128xf32>
    %179 = vector.extract_strided_slice %172 {offsets = [0, 128], sizes = [8, 128], strides = [1, 1]} : vector<8x512xf32> to vector<8x128xf32>
    %180 = arith.negf %179 : vector<8x128xf32>
    %181 = math.exp %180 : vector<8x128xf32>
    %cst_40 = arith.constant 1.000000e+00 : f32
    %182 = vector.broadcast %cst_40 : f32 to vector<8x128xf32>
    %183 = arith.addf %182, %181 : vector<8x128xf32>
    %184 = arith.divf %182, %183 : vector<8x128xf32>
    %185 = vector.extract_strided_slice %172 {offsets = [0, 256], sizes = [8, 128], strides = [1, 1]} : vector<8x512xf32> to vector<8x128xf32>
    %186 = math.tanh %185 : vector<8x128xf32>
    %187 = vector.extract_strided_slice %172 {offsets = [0, 384], sizes = [8, 128], strides = [1, 1]} : vector<8x512xf32> to vector<8x128xf32>
    %188 = arith.negf %187 : vector<8x128xf32>
    %189 = math.exp %188 : vector<8x128xf32>
    %cst_41 = arith.constant 1.000000e+00 : f32
    %190 = vector.broadcast %cst_41 : f32 to vector<8x128xf32>
    %191 = arith.addf %190, %189 : vector<8x128xf32>
    %192 = arith.divf %190, %191 : vector<8x128xf32>
    %193 = arith.mulf %184, %163 : vector<8x128xf32>
    %194 = arith.mulf %178, %186 : vector<8x128xf32>
    %195 = arith.addf %193, %194 : vector<8x128xf32>
    %196 = math.tanh %195 : vector<8x128xf32>
    %197 = arith.mulf %192, %196 : vector<8x128xf32>
    %c6_i32 = arith.constant 6 : i32
    %198 = arith.index_cast %c6_i32 : i32 to index
    %c0_42 = arith.constant 0 : index
    %c0_43 = arith.constant 0 : index
    %199 = vector.load %arg1[%198, %c0_42, %c0_43] : memref<8x8x512xbf16, #tpu.memory_space<vmem>>, vector<1x8x512xbf16>
    %200 = vector.shape_cast %199 : vector<1x8x512xbf16> to vector<8x512xbf16>
    %201 = arith.extf %200 : vector<8x512xbf16> to vector<8x512xf32>
    %202 = arith.truncf %197 : vector<8x128xf32> to vector<8x128xbf16>
    %cst_44 = arith.constant dense<0.000000e+00> : vector<8x512xf32>
    %203 = tpu.matmul %202, %3, %cst_44 {dimension_numbers = #tpu.dot_dimension_numbers<[1], [0], [0], [1], [0, 0, 1, 1], [], []>} : vector<8x128xbf16>, vector<128x512xbf16>, vector<8x512xf32> -> vector<8x512xf32>
    %204 = arith.addf %201, %203 : vector<8x512xf32>
    %205 = vector.extract_strided_slice %204 {offsets = [0, 0], sizes = [8, 128], strides = [1, 1]} : vector<8x512xf32> to vector<8x128xf32>
    %206 = arith.negf %205 : vector<8x128xf32>
    %207 = math.exp %206 : vector<8x128xf32>
    %cst_45 = arith.constant 1.000000e+00 : f32
    %208 = vector.broadcast %cst_45 : f32 to vector<8x128xf32>
    %209 = arith.addf %208, %207 : vector<8x128xf32>
    %210 = arith.divf %208, %209 : vector<8x128xf32>
    %211 = vector.extract_strided_slice %204 {offsets = [0, 128], sizes = [8, 128], strides = [1, 1]} : vector<8x512xf32> to vector<8x128xf32>
    %212 = arith.negf %211 : vector<8x128xf32>
    %213 = math.exp %212 : vector<8x128xf32>
    %cst_46 = arith.constant 1.000000e+00 : f32
    %214 = vector.broadcast %cst_46 : f32 to vector<8x128xf32>
    %215 = arith.addf %214, %213 : vector<8x128xf32>
    %216 = arith.divf %214, %215 : vector<8x128xf32>
    %217 = vector.extract_strided_slice %204 {offsets = [0, 256], sizes = [8, 128], strides = [1, 1]} : vector<8x512xf32> to vector<8x128xf32>
    %218 = math.tanh %217 : vector<8x128xf32>
    %219 = vector.extract_strided_slice %204 {offsets = [0, 384], sizes = [8, 128], strides = [1, 1]} : vector<8x512xf32> to vector<8x128xf32>
    %220 = arith.negf %219 : vector<8x128xf32>
    %221 = math.exp %220 : vector<8x128xf32>
    %cst_47 = arith.constant 1.000000e+00 : f32
    %222 = vector.broadcast %cst_47 : f32 to vector<8x128xf32>
    %223 = arith.addf %222, %221 : vector<8x128xf32>
    %224 = arith.divf %222, %223 : vector<8x128xf32>
    %225 = arith.mulf %216, %195 : vector<8x128xf32>
    %226 = arith.mulf %210, %218 : vector<8x128xf32>
    %227 = arith.addf %225, %226 : vector<8x128xf32>
    %228 = math.tanh %227 : vector<8x128xf32>
    %229 = arith.mulf %224, %228 : vector<8x128xf32>
    %c7_i32 = arith.constant 7 : i32
    %230 = arith.index_cast %c7_i32 : i32 to index
    %c0_48 = arith.constant 0 : index
    %c0_49 = arith.constant 0 : index
    %231 = vector.load %arg1[%230, %c0_48, %c0_49] : memref<8x8x512xbf16, #tpu.memory_space<vmem>>, vector<1x8x512xbf16>
    %232 = vector.shape_cast %231 : vector<1x8x512xbf16> to vector<8x512xbf16>
    %233 = arith.extf %232 : vector<8x512xbf16> to vector<8x512xf32>
    %234 = arith.truncf %229 : vector<8x128xf32> to vector<8x128xbf16>
    %cst_50 = arith.constant dense<0.000000e+00> : vector<8x512xf32>
    %235 = tpu.matmul %234, %3, %cst_50 {dimension_numbers = #tpu.dot_dimension_numbers<[1], [0], [0], [1], [0, 0, 1, 1], [], []>} : vector<8x128xbf16>, vector<128x512xbf16>, vector<8x512xf32> -> vector<8x512xf32>
    %236 = arith.addf %233, %235 : vector<8x512xf32>
    %237 = vector.extract_strided_slice %236 {offsets = [0, 0], sizes = [8, 128], strides = [1, 1]} : vector<8x512xf32> to vector<8x128xf32>
    %238 = arith.negf %237 : vector<8x128xf32>
    %239 = math.exp %238 : vector<8x128xf32>
    %cst_51 = arith.constant 1.000000e+00 : f32
    %240 = vector.broadcast %cst_51 : f32 to vector<8x128xf32>
    %241 = arith.addf %240, %239 : vector<8x128xf32>
    %242 = arith.divf %240, %241 : vector<8x128xf32>
    %243 = vector.extract_strided_slice %236 {offsets = [0, 128], sizes = [8, 128], strides = [1, 1]} : vector<8x512xf32> to vector<8x128xf32>
    %244 = arith.negf %243 : vector<8x128xf32>
    %245 = math.exp %244 : vector<8x128xf32>
    %cst_52 = arith.constant 1.000000e+00 : f32
    %246 = vector.broadcast %cst_52 : f32 to vector<8x128xf32>
    %247 = arith.addf %246, %245 : vector<8x128xf32>
    %248 = arith.divf %246, %247 : vector<8x128xf32>
    %249 = vector.extract_strided_slice %236 {offsets = [0, 256], sizes = [8, 128], strides = [1, 1]} : vector<8x512xf32> to vector<8x128xf32>
    %250 = math.tanh %249 : vector<8x128xf32>
    %251 = vector.extract_strided_slice %236 {offsets = [0, 384], sizes = [8, 128], strides = [1, 1]} : vector<8x512xf32> to vector<8x128xf32>
    %252 = arith.negf %251 : vector<8x128xf32>
    %253 = math.exp %252 : vector<8x128xf32>
    %cst_53 = arith.constant 1.000000e+00 : f32
    %254 = vector.broadcast %cst_53 : f32 to vector<8x128xf32>
    %255 = arith.addf %254, %253 : vector<8x128xf32>
    %256 = arith.divf %254, %255 : vector<8x128xf32>
    %257 = arith.mulf %248, %227 : vector<8x128xf32>
    %258 = arith.mulf %242, %250 : vector<8x128xf32>
    %259 = arith.addf %257, %258 : vector<8x128xf32>
    %260 = math.tanh %259 : vector<8x128xf32>
    %261 = arith.mulf %256, %260 : vector<8x128xf32>
    %c8_i32 = arith.constant 8 : i32
    %c0_54 = arith.constant 0 : index
    %c0_55 = arith.constant 0 : index
    %262 = vector.load %arg10[%c0_54, %c0_55] : memref<8x128xf32, #tpu.memory_space<vmem>>, vector<8x128xf32>
    tpu.vector_store %arg10[%c0_54, %c0_55], %261 {strides = array<i32>} : memref<8x128xf32, #tpu.memory_space<vmem>>, vector<8x128xf32>,
    %c0_56 = arith.constant 0 : index
    %c0_57 = arith.constant 0 : index
    %263 = vector.load %arg11[%c0_56, %c0_57] : memref<8x128xf32, #tpu.memory_space<vmem>>, vector<8x128xf32>
    tpu.vector_store %arg11[%c0_56, %c0_57], %259 {strides = array<i32>} : memref<8x128xf32, #tpu.memory_space<vmem>>, vector<8x128xf32>,
    %c0_i32_58 = arith.constant 0 : i32
    %264 = arith.cmpi eq, %arg0, %c0_i32_58 : i32
    %265 = arith.extui %264 : i1 to i32
    %c0_i32_59 = arith.constant 0 : i32
    %266 = arith.cmpi ne, %265, %c0_i32_59 : i32
    scf.if %266 {
      %267 = arith.truncf %261 : vector<8x128xf32> to vector<8x128xbf16>
      %c0_60 = arith.constant 0 : index
      %c0_61 = arith.constant 0 : index
      %268 = vector.load %arg3[%c0_60, %c0_61] : memref<128x128xbf16, #tpu.memory_space<vmem>>, vector<128x128xbf16>
      %cst_62 = arith.constant dense<0.000000e+00> : vector<8x128xf32>
      %269 = tpu.matmul %267, %268, %cst_62 {dimension_numbers = #tpu.dot_dimension_numbers<[1], [0], [0], [1], [0, 0, 1, 1], [], []>} : vector<8x128xbf16>, vector<128x128xbf16>, vector<8x128xf32> -> vector<8x128xf32>
      %c0_63 = arith.constant 0 : index
      %c0_64 = arith.constant 0 : index
      %270 = vector.load %arg4[%c0_63, %c0_64] : memref<1x128xf32, #tpu.memory_space<vmem>>, vector<1x128xf32>
      %271 = vector.broadcast %270 : vector<1x128xf32> to vector<8x128xf32>
      %272 = arith.addf %269, %271 : vector<8x128xf32>
      %273 = arith.truncf %272 : vector<8x128xf32> to vector<8x128xbf16>
      %c0_65 = arith.constant 0 : index
      %c0_66 = arith.constant 0 : index
      %274 = vector.load %arg5[%c0_65, %c0_66] : memref<128x128xbf16, #tpu.memory_space<vmem>>, vector<128x128xbf16>
      %cst_67 = arith.constant dense<0.000000e+00> : vector<8x128xf32>
      %275 = tpu.matmul %273, %274, %cst_67 {dimension_numbers = #tpu.dot_dimension_numbers<[1], [0], [0], [1], [0, 0, 1, 1], [], []>} : vector<8x128xbf16>, vector<128x128xbf16>, vector<8x128xf32> -> vector<8x128xf32>
      %c0_68 = arith.constant 0 : index
      %c0_69 = arith.constant 0 : index
      %276 = vector.load %arg6[%c0_68, %c0_69] : memref<1x128xf32, #tpu.memory_space<vmem>>, vector<1x128xf32>
      %277 = vector.broadcast %276 : vector<1x128xf32> to vector<8x128xf32>
      %278 = arith.addf %275, %277 : vector<8x128xf32>
      %cst_70 = arith.constant 0.000000e+00 : f32
      %279 = vector.broadcast %cst_70 : f32 to vector<8x128xf32>
      %280 = arith.maximumf %278, %279 : vector<8x128xf32>
      %281 = arith.truncf %280 : vector<8x128xf32> to vector<8x128xbf16>
      %c0_71 = arith.constant 0 : index
      %c0_72 = arith.constant 0 : index
      %282 = vector.load %arg7[%c0_71, %c0_72] : memref<128x128xbf16, #tpu.memory_space<vmem>>, vector<128x128xbf16>
      %cst_73 = arith.constant dense<0.000000e+00> : vector<8x128xf32>
      %283 = tpu.matmul %281, %282, %cst_73 {dimension_numbers = #tpu.dot_dimension_numbers<[1], [0], [0], [1], [0, 0, 1, 1], [], []>} : vector<8x128xbf16>, vector<128x128xbf16>, vector<8x128xf32> -> vector<8x128xf32>
      %c0_74 = arith.constant 0 : index
      %c0_75 = arith.constant 0 : index
      %284 = vector.load %arg8[%c0_74, %c0_75] : memref<1x128xf32, #tpu.memory_space<vmem>>, vector<1x128xf32>
      %285 = vector.broadcast %284 : vector<1x128xf32> to vector<8x128xf32>
      %286 = arith.addf %283, %285 : vector<8x128xf32>
      %c0_76 = arith.constant 0 : index
      %c0_77 = arith.constant 0 : index
      %287 = vector.load %arg9[%c0_76, %c0_77] : memref<8x128xf32, #tpu.memory_space<vmem>>, vector<8x128xf32>
      tpu.vector_store %arg9[%c0_76, %c0_77], %286 {strides = array<i32>} : memref<8x128xf32, #tpu.memory_space<vmem>>, vector<8x128xf32>,
    } else {
    }
    return
  }
  func.func @transform_0(%arg0: i32) -> (i32, i32, i32) {
    %c0_i32 = arith.constant 0 : i32
    %c0_i32_0 = arith.constant 0 : i32
    %c0_i32_1 = arith.constant 0 : i32
    return %arg0, %c0_i32, %c0_i32_0 : i32, i32, i32
  }
  func.func @transform_1(%arg0: i32) -> (i32, i32) {
    %c0_i32 = arith.constant 0 : i32
    %c0_i32_0 = arith.constant 0 : i32
    %c0_i32_1 = arith.constant 0 : i32
    return %c0_i32, %c0_i32_0 : i32, i32
  }
  func.func @transform_2(%arg0: i32) -> (i32, i32) {
    %c0_i32 = arith.constant 0 : i32
    %c0_i32_0 = arith.constant 0 : i32
    %c0_i32_1 = arith.constant 0 : i32
    return %c0_i32, %c0_i32_0 : i32, i32
  }
  func.func @transform_3(%arg0: i32) -> (i32, i32) {
    %c0_i32 = arith.constant 0 : i32
    %c0_i32_0 = arith.constant 0 : i32
    %c0_i32_1 = arith.constant 0 : i32
    return %c0_i32, %c0_i32_0 : i32, i32
  }
  func.func @transform_4(%arg0: i32) -> (i32, i32) {
    %c0_i32 = arith.constant 0 : i32
    %c0_i32_0 = arith.constant 0 : i32
    %c0_i32_1 = arith.constant 0 : i32
    return %c0_i32, %c0_i32_0 : i32, i32
  }
  func.func @transform_5(%arg0: i32) -> (i32, i32) {
    %c0_i32 = arith.constant 0 : i32
    %c0_i32_0 = arith.constant 0 : i32
    %c0_i32_1 = arith.constant 0 : i32
    return %c0_i32, %c0_i32_0 : i32, i32
  }
  func.func @transform_6(%arg0: i32) -> (i32, i32) {
    %c0_i32 = arith.constant 0 : i32
    %c0_i32_0 = arith.constant 0 : i32
    %c0_i32_1 = arith.constant 0 : i32
    return %c0_i32, %c0_i32_0 : i32, i32
  }
  func.func @transform_7(%arg0: i32) -> (i32, i32) {
    %c0_i32 = arith.constant 0 : i32
    %c0_i32_0 = arith.constant 0 : i32
    %c0_i32_1 = arith.constant 0 : i32
    return %c0_i32, %c0_i32_0 : i32, i32
  }
  func.func @transform_8(%arg0: i32) -> (i32, i32) {
    %c0_i32 = arith.constant 0 : i32
    %c0_i32_0 = arith.constant 0 : i32
    %c0_i32_1 = arith.constant 0 : i32
    return %c0_i32, %c0_i32_0 : i32, i32
  }
}

</mosaic_0001>

<bundles_post_ra>
// kernel: emotion_classifier_forward.2
= control target key start
LH: loop header
LB: loop body
LE: loop exit
PB: predicated region body
PF: predicated region fallthrough
CT: control target
= control target key end

     0   :  { %vm101_vm0 = vcmask 261120   ;;  %s529_s1 = inlined_call_operand.vmem [shape: bf16[32,512], index: 1, kind: input, shape index: {}]   ;;  %s530_s0 = inlined_call_operand.vmem [shape: bf16[64,32], index: 0, kind: input, shape index: {}]   ;;  %s531_s2 = inlined_call_operand.vmem [shape: f32[1,512], index: 2, kind: input, shape index: {}]   ;;  %s532_s3 = inlined_call_operand.vmem [shape: bf16[64,512], index: 3, kind: output, shape index: {}]  }
   0x1   :  { %v300_v0 = vld [vmem:[%s529_s1 + $0x20] sm:$0xf]  ;;  %v340_v1 = vld [vmem:[%s529_s1 + $0x2c] sm:$0xf0]  ;;  %v338_v2 = vld [vmem:[%s529_s1 + $0x24] sm:$0xf] }
   0x2   :  { %v301_v3 = vor.u32 %v340_v1, %v300_v0  ;;  %v302_v4 = vld [vmem:[%s529_s1 + $0x30] sm:$0xf0]  ;;  %v308_v5 = vld [vmem:[%s529_s1 + $0x28] sm:$0xf]  ;;  %v341_v6 = vld [vmem:[%s529_s1 + $0x34] sm:$0xf0] }
   0x3   :  { %v305_v7 = vor.u32 %v338_v2, %v302_v4  ;;  %v309_v8 = vor.u32 %v341_v6, %v308_v5  ;;  %v339_v9 = vld [vmem:[%s529_s1 + $0x2c] sm:$0xf]  ;;  %v310_v10 = vld [vmem:[%s529_s1 + $0x38] sm:$0xf0]  ;;  %v284_v11 = vld [vmem:[%s529_s1] sm:$0xf] }
   0x4   :  { %120 = vmatpush.bf16.msra.mxu0 %v301_v3  ;;  %v313_v12 = vor.u32 %v339_v9, %v310_v10  ;;  %v336_v13 = vld [vmem:[%s529_s1 + $0xc] sm:$0xf0]  ;;  %v334_v14 = vld [vmem:[%s529_s1 + $0x4] sm:$0xf]  ;;  %v286_v15 = vld [vmem:[%s529_s1 + $0x10] sm:$0xf0] }
   0x5   :  { %149 = vmatpush.bf16.msra.mxu1 %v305_v7  ;;  %178 = vmatpush.bf16.msra.mxu2 %v309_v8  ;;  %v285_v16 = vor.u32 %v336_v13, %v284_v11  ;;  %v289_v17 = vor.u32 %v334_v14, %v286_v15  ;;  %v292_v18 = vld [vmem:[%s529_s1 + $0x8] sm:$0xf]  ;;  %v337_v19 = vld [vmem:[%s529_s1 + $0x14] sm:$0xf0]  ;;  %v335_v20 = vld [vmem:[%s529_s1 + $0xc] sm:$0xf] }
   0x6   :  { %207 = vmatpush.bf16.msra.mxu3 %v313_v12  ;;  %v293_v21 = vor.u32 %v337_v19, %v292_v18  ;;  %v294_v22 = vld [vmem:[%s529_s1 + $0x18] sm:$0xf0]  ;;  %v330_v24 = vld [vmem:[%s530_s0] sm:$0xff]  ;;  %v331_v25 = vld [vmem:[%s530_s0 + $0x8] sm:$0xff] }
   0x7   :  { %v297_v23 = vor.u32 %v335_v20, %v294_v22  ;;  %v332_v26 = vld [vmem:[%s530_s0 + $0x10] sm:$0xff]  ;;  %v333_v27 = vld [vmem:[%s530_s0 + $0x18] sm:$0xff]  ;;  %v31_v28 = vld [vmem:[%s531_s2] sm:$0xf] }
   0x8   :  { %121 = vmatpush.bf16.msra.mxu0 %v285_v16  ;;  %v441_v29 = vperm.slane %v31_v28, 0  ;;  %v443_v30 = vperm.slane %v31_v28, 1  ;;  %v447_v36 = vperm.slane %v31_v28, 2  ;;  %v449_v37 = vperm.slane %v31_v28, 3 }
   0x9   :  { %150 = vmatpush.bf16.msra.mxu1 %v289_v17  ;;  %179 = vmatpush.bf16.msra.mxu2 %v293_v21 }
   0xa   :  { %208 = vmatpush.bf16.msra.mxu3 %v297_v23 }
   0xb   :  { %314 = vmatmul.msk.bf16.vlgmr.msra.gmra.mxu0 %vm101_vm0, %v330_v24 }
   0xc   :  { %318 = vmatmul.msk.bf16.vlgmr.msra.gmra.mxu1 %vm101_vm0, %v330_v24  ;;  %322 = vmatmul.msk.bf16.vlgmr.msra.gmra.mxu2 %vm101_vm0, %v330_v24 }
   0xd   :  { %326 = vmatmul.msk.bf16.vlgmr.msra.gmra.mxu3 %vm101_vm0, %v330_v24 }
  0x1b   :  { %315 = vmatmul.msk.bf16.gmra.mxu0 %vm101_vm0, %v331_v25 }
  0x1c   :  { %319 = vmatmul.msk.bf16.gmra.mxu1 %vm101_vm0, %v331_v25  ;;  %323 = vmatmul.msk.bf16.gmra.mxu2 %vm101_vm0, %v331_v25 }
  0x1d   :  { %327 = vmatmul.msk.bf16.gmra.mxu3 %vm101_vm0, %v331_v25 }
  0x2b   :  { %316 = vmatmul.msk.bf16.gmra.mxu0 %vm101_vm0, %v332_v26 }
  0x2c   :  { %320 = vmatmul.msk.bf16.gmra.mxu1 %vm101_vm0, %v332_v26  ;;  %324 = vmatmul.msk.bf16.gmra.mxu2 %vm101_vm0, %v332_v26 }
  0x2d   :  { %328 = vmatmul.msk.bf16.gmra.mxu3 %vm101_vm0, %v332_v26 }
  0x3b   :  { %317 = vmatmul.msk.bf16.gmra.mxu0 %vm101_vm0, %v333_v27 }
  0x3c   :  { %321 = vmatmul.msk.bf16.gmra.mxu1 %vm101_vm0, %v333_v27  ;;  %325 = vmatmul.msk.bf16.gmra.mxu2 %vm101_vm0, %v333_v27 }
  0x3d   :  { %329 = vmatmul.msk.bf16.gmra.mxu3 %vm101_vm0, %v333_v27 }
  0x88   :  { %v123_v31 = vpop.f32.mrf.mxu0 }
  0x89   :  { %v124_v32 = vadd.f32 %v123_v31, %v441_v29  ;;  %v152_v33 = vpop.f32.mrf.mxu1 }
  0x8a   :  { %v153_v34 = vadd.f32 %v152_v33, %v443_v30 }
  0x8c   :  { %v230_v35 = vpack.c.bf16 %v153_v34, %v124_v32 }
  0x8e   :  { %246 = vst [vmem:[%s532_s3] sm:$0xff] %v230_v35 }
  0x8f   :  { %v181_v38 = vpop.f32.mrf.mxu2 }
  0x90   :  { %v182_v39 = vadd.f32 %v181_v38, %v447_v36  ;;  %v210_v40 = vpop.f32.mrf.mxu3  ;;  %v125_v41 = vpop.f32.mrf.mxu0 }
  0x91   :  { %v211_v42 = vadd.f32 %v210_v40, %v449_v37  ;;  %v126_v43 = vadd.f32 %v125_v41, %v441_v29  ;;  %v154_v44 = vpop.f32.mrf.mxu1 }
  0x92   :  { %v155_v45 = vadd.f32 %v154_v44, %v443_v30 }
  0x93   :  { %v231_v46 = vpack.c.bf16 %v211_v42, %v182_v39 }
  0x94   :  { %v232_v47 = vpack.c.bf16 %v155_v45, %v126_v43 }
  0x95   :  { %247 = vst [vmem:[%s532_s3 + $0x8] sm:$0xff] %v231_v46 }
  0x96   :  { %248 = vst [vmem:[%s532_s3 + $0x10] sm:$0xff] %v232_v47 }
  0x97   :  { %v183_v48 = vpop.f32.mrf.mxu2 }
  0x98   :  { %v184_v49 = vadd.f32 %v183_v48, %v447_v36  ;;  %v212_v50 = vpop.f32.mrf.mxu3  ;;  %v128_v51 = vpop.f32.mrf.mxu0 }
  0x99   :  { %v213_v52 = vadd.f32 %v212_v50, %v449_v37  ;;  %v129_v53 = vadd.f32 %v128_v51, %v441_v29  ;;  %v157_v54 = vpop.f32.mrf.mxu1 }
  0x9a   :  { %v158_v55 = vadd.f32 %v157_v54, %v443_v30 }
  0x9b   :  { %v233_v56 = vpack.c.bf16 %v213_v52, %v184_v49 }
  0x9c   :  { %v234_v57 = vpack.c.bf16 %v158_v55, %v129_v53 }
  0x9d   :  { %249 = vst [vmem:[%s532_s3 + $0x18] sm:$0xff] %v233_v56 }
  0x9e   :  { %250 = vst [vmem:[%s532_s3 + $0x20] sm:$0xff] %v234_v57 }
  0x9f   :  { %v186_v58 = vpop.f32.mrf.mxu2 }
  0xa0   :  { %v187_v59 = vadd.f32 %v186_v58, %v447_v36  ;;  %v215_v60 = vpop.f32.mrf.mxu3  ;;  %v130_v61 = vpop.f32.mrf.mxu0 }
  0xa1   :  { %v216_v62 = vadd.f32 %v215_v60, %v449_v37  ;;  %v131_v63 = vadd.f32 %v130_v61, %v441_v29  ;;  %v159_v0 = vpop.f32.mrf.mxu1 }
  0xa2   :  { %v160_v1 = vadd.f32 %v159_v0, %v443_v30 }
  0xa3   :  { %v235_v2 = vpack.c.bf16 %v216_v62, %v187_v59 }
  0xa4   :  { %v236_v3 = vpack.c.bf16 %v160_v1, %v131_v63 }
  0xa5   :  { %251 = vst [vmem:[%s532_s3 + $0x28] sm:$0xff] %v235_v2 }
  0xa6   :  { %252 = vst [vmem:[%s532_s3 + $0x30] sm:$0xff] %v236_v3 }
  0xa7   :  { %v188_v4 = vpop.f32.mrf.mxu2 }
  0xa8   :  { %v189_v5 = vadd.f32 %v188_v4, %v447_v36  ;;  %v217_v6 = vpop.f32.mrf.mxu3  ;;  %v133_v7 = vpop.f32.mrf.mxu0 }
  0xa9   :  { %v218_v8 = vadd.f32 %v217_v6, %v449_v37  ;;  %v134_v9 = vadd.f32 %v133_v7, %v441_v29  ;;  %v162_v10 = vpop.f32.mrf.mxu1 }
  0xaa   :  { %v163_v11 = vadd.f32 %v162_v10, %v443_v30 }
  0xab   :  { %v237_v12 = vpack.c.bf16 %v218_v8, %v189_v5 }
  0xac   :  { %v238_v13 = vpack.c.bf16 %v163_v11, %v134_v9 }
  0xad   :  { %253 = vst [vmem:[%s532_s3 + $0x38] sm:$0xff] %v237_v12 }
  0xae   :  { %254 = vst [vmem:[%s532_s3 + $0x40] sm:$0xff] %v238_v13 }
  0xaf   :  { %v191_v14 = vpop.f32.mrf.mxu2 }
  0xb0   :  { %v192_v15 = vadd.f32 %v191_v14, %v447_v36  ;;  %v220_v16 = vpop.f32.mrf.mxu3  ;;  %v135_v17 = vpop.f32.mrf.mxu0 }
  0xb1   :  { %v221_v18 = vadd.f32 %v220_v16, %v449_v37  ;;  %v136_v19 = vadd.f32 %v135_v17, %v441_v29  ;;  %v164_v20 = vpop.f32.mrf.mxu1 }
  0xb2   :  { %v165_v21 = vadd.f32 %v164_v20, %v443_v30 }
  0xb3   :  { %v239_v22 = vpack.c.bf16 %v221_v18, %v192_v15 }
  0xb4   :  { %v240_v23 = vpack.c.bf16 %v165_v21, %v136_v19 }
  0xb5   :  { %255 = vst [vmem:[%s532_s3 + $0x48] sm:$0xff] %v239_v22 }
  0xb6   :  { %256 = vst [vmem:[%s532_s3 + $0x50] sm:$0xff] %v240_v23 }
  0xb7   :  { %v193_v24 = vpop.f32.mrf.mxu2 }
  0xb8   :  { %v194_v25 = vadd.f32 %v193_v24, %v447_v36  ;;  %v222_v26 = vpop.f32.mrf.mxu3  ;;  %v138_v27 = vpop.f32.mrf.mxu0 }
  0xb9   :  { %v223_v28 = vadd.f32 %v222_v26, %v449_v37  ;;  %v139_v31 = vadd.f32 %v138_v27, %v441_v29  ;;  %v167_v32 = vpop.f32.mrf.mxu1 }
  0xba   :  { %v168_v33 = vadd.f32 %v167_v32, %v443_v30 }
  0xbb   :  { %v241_v34 = vpack.c.bf16 %v223_v28, %v194_v25 }
  0xbc   :  { %v242_v35 = vpack.c.bf16 %v168_v33, %v139_v31 }
  0xbd   :  { %257 = vst [vmem:[%s532_s3 + $0x58] sm:$0xff] %v241_v34 }
  0xbe   :  { %258 = vst [vmem:[%s532_s3 + $0x60] sm:$0xff] %v242_v35 }
  0xbf   :  { %v196_v38 = vpop.f32.mrf.mxu2 }
  0xc0   :  { %v197_v39 = vadd.f32 %v196_v38, %v447_v36  ;;  %v225_v40 = vpop.f32.mrf.mxu3  ;;  %v140_v41 = vpop.f32.mrf.mxu0 }
  0xc1   :  { %v226_v42 = vadd.f32 %v225_v40, %v449_v37  ;;  %v141_v43 = vadd.f32 %v140_v41, %v441_v29  ;;  %v169_v44 = vpop.f32.mrf.mxu1 }
  0xc2   :  { %v170_v45 = vadd.f32 %v169_v44, %v443_v30 }
  0xc3   :  { %v243_v46 = vpack.c.bf16 %v226_v42, %v197_v39 }
  0xc4   :  { %v244_v47 = vpack.c.bf16 %v170_v45, %v141_v43 }
  0xc5   :  { %259 = vst [vmem:[%s532_s3 + $0x68] sm:$0xff] %v243_v46 }
  0xc6   :  { %260 = vst [vmem:[%s532_s3 + $0x70] sm:$0xff] %v244_v47 }
  0xc7   :  { %v198_v48 = vpop.f32.mrf.mxu2 }
  0xc8   :  { %v199_v49 = vadd.f32 %v198_v48, %v447_v36  ;;  %v227_v50 = vpop.f32.mrf.mxu3 }
  0xc9   :  { %v228_v51 = vadd.f32 %v227_v50, %v449_v37 }
  0xcb   :  { %v245_v29 = vpack.c.bf16 %v228_v51, %v199_v49 }
  0xcd   :  { %261 = vst [vmem:[%s532_s3 + $0x78] sm:$0xff] %v245_v29 }

// kernel: emotion_classifier_forward.3
= control target key start
LH: loop header
LB: loop body
LE: loop exit
PB: predicated region body
PF: predicated region fallthrough
CT: control target
= control target key end

     0   :  { %s2669_s1 = inlined_call_operand.vmem [shape: bf16[128,512], index: 1, kind: input, shape index: {}]   ;;  %s2670_s0 = inlined_call_operand.vmem [shape: bf16[8,8,512], index: 0, kind: input, shape index: {}]   ;;  %s2671_s3 = inlined_call_operand.vmem [shape: f32[1,128], index: 3, kind: input, shape index: {}]   ;;  %s2672_s2 = inlined_call_operand.vmem [shape: bf16[128,128], index: 2, kind: input, shape index: {}]   ;;  %s2673_s4 = inlined_call_operand.vmem [shape: bf16[128,128], index: 4, kind: input, shape index: {}]   ;;  %s2674_s5 = inlined_call_operand.vmem [shape: f32[1,128], index: 5, kind: input, shape index: {}]   ;;  %s2675_s6 = inlined_call_operand.vmem [shape: bf16[128,128], index: 6, kind: input, shape index: {}]   ;;  %s2676_s7 = inlined_call_operand.vmem [shape: f32[1,128], index: 7, kind: input, shape index: {}]   ;;  %s2677_s8 = inlined_call_operand.vmem [shape: f32[8,128], index: 8, kind: output, shape index: {}]  }
   0x1   :  { %v1615_v0 = vld [vmem:[%s2669_s1 + $0xe0] sm:$0xf]  ;;  %v1793_v1 = vld [vmem:[%s2669_s1 + $0xec] sm:$0xf0]  ;;  %v1791_v2 = vld [vmem:[%s2669_s1 + $0xe4] sm:$0xf] }
   0x2   :  { %v2006_v3 = vor.u32 %v1793_v1, %v1615_v0  ;;  %v1617_v4 = vld [vmem:[%s2669_s1 + $0xf0] sm:$0xf0]  ;;  %v1792_v5 = vld [vmem:[%s2669_s1 + $0xec] sm:$0xf]  ;;  %v1625_v6 = vld [vmem:[%s2669_s1 + $0xf8] sm:$0xf0] }
   0x3   :  { %v2017_v7 = vor.u32 %v1791_v2, %v1617_v4  ;;  %v2019_v8 = vor.u32 %v1792_v5, %v1625_v6  ;;  %v1599_v9 = vld [vmem:[%s2669_s1 + $0xc0] sm:$0xf]  ;;  %v1789_v10 = vld [vmem:[%s2669_s1 + $0xcc] sm:$0xf0]  ;;  %v1787_v11 = vld [vmem:[%s2669_s1 + $0xc4] sm:$0xf] }
   0x4   :  { %236 = vmatpush.bf16.msra.mxu0 %v2006_v3  ;;  %v2031_v12 = vor.u32 %v1789_v10, %v1599_v9  ;;  %v1601_v13 = vld [vmem:[%s2669_s1 + $0xd0] sm:$0xf0]  ;;  %v1788_v14 = vld [vmem:[%s2669_s1 + $0xcc] sm:$0xf]  ;;  %v1609_v15 = vld [vmem:[%s2669_s1 + $0xd8] sm:$0xf0] }
   0x5   :  { %249 = vmatpush.bf16.msra.mxu1 %v2017_v7  ;;  %275 = vmatpush.bf16.msra.mxu3 %v2019_v8  ;;  %v2044_v16 = vor.u32 %v1787_v11, %v1601_v13  ;;  %v2046_v17 = vor.u32 %v1788_v14, %v1609_v15  ;;  %v1623_v18 = vld [vmem:[%s2669_s1 + $0xe8] sm:$0xf]  ;;  %v1794_v19 = vld [vmem:[%s2669_s1 + $0xf4] sm:$0xf0]  ;;  %v1583_v20 = vld [vmem:[%s2669_s1 + $0xa0] sm:$0xf] }
   0x6   :  { %v2057_v21 = vor.u32 %v1794_v19, %v1623_v18  ;;  %v1785_v22 = vld [vmem:[%s2669_s1 + $0xac] sm:$0xf0]  ;;  %v1783_v23 = vld [vmem:[%s2669_s1 + $0xa4] sm:$0xf]  ;;  %v1585_v24 = vld [vmem:[%s2669_s1 + $0xb0] sm:$0xf0] }
   0x7   :  { %v1784_v25 = vld [vmem:[%s2669_s1 + $0xac] sm:$0xf]  ;;  %v1593_v26 = vld [vmem:[%s2669_s1 + $0xb8] sm:$0xf0]  ;;  %v1607_v27 = vld [vmem:[%s2669_s1 + $0xc8] sm:$0xf]  ;;  %v2079_v28 = vor.u32 %v1785_v22, %v1583_v20  ;;  %v2092_v32 = vor.u32 %v1783_v23, %v1585_v24 }
   0x8   :  { %237 = vmatpush.bf16.msra.mxu0 %v2031_v12  ;;  %262 = vmatpush.bf16.msra.mxu2 %v2057_v21  ;;  %v1790_v29 = vld [vmem:[%s2669_s1 + $0xd4] sm:$0xf0]  ;;  %v1567_v30 = vld [vmem:[%s2669_s1 + $0x80] sm:$0xf]  ;;  %v1781_v31 = vld [vmem:[%s2669_s1 + $0x8c] sm:$0xf0]  ;;  %v2094_v33 = vor.u32 %v1784_v25, %v1593_v26 }
   0x9   :  { %250 = vmatpush.bf16.msra.mxu1 %v2044_v16  ;;  %276 = vmatpush.bf16.msra.mxu3 %v2046_v17  ;;  %v2096_v34 = vor.u32 %v1790_v29, %v1607_v27  ;;  %v1779_v35 = vld [vmem:[%s2669_s1 + $0x84] sm:$0xf]  ;;  %v1569_v36 = vld [vmem:[%s2669_s1 + $0x90] sm:$0xf0]  ;;  %v1780_v37 = vld [vmem:[%s2669_s1 + $0x8c] sm:$0xf]  ;;  %v2118_v41 = vor.u32 %v1781_v31, %v1567_v30 }
   0xa   :  { %v1577_v38 = vld [vmem:[%s2669_s1 + $0x98] sm:$0xf0]  ;;  %v1591_v39 = vld [vmem:[%s2669_s1 + $0xa8] sm:$0xf]  ;;  %v1786_v40 = vld [vmem:[%s2669_s1 + $0xb4] sm:$0xf0]  ;;  %v2130_v45 = vor.u32 %v1779_v35, %v1569_v36 }
   0xb   :  { %v2120_v42 = vor.u32 %v1786_v40, %v1591_v39  ;;  %v1551_v43 = vld [vmem:[%s2669_s1 + $0x60] sm:$0xf]  ;;  %v1777_v44 = vld [vmem:[%s2669_s1 + $0x6c] sm:$0xf0]  ;;  %v2132_v46 = vor.u32 %v1780_v37, %v1577_v38  ;;  %v1775_v47 = vld [vmem:[%s2669_s1 + $0x64] sm:$0xf] }
   0xc   :  { %238 = vmatpush.bf16.msra.mxu0 %v2079_v28  ;;  %263 = vmatpush.bf16.msra.mxu2 %v2096_v34  ;;  %v1575_v48 = vld [vmem:[%s2669_s1 + $0x88] sm:$0xf]  ;;  %v1782_v49 = vld [vmem:[%s2669_s1 + $0x94] sm:$0xf0]  ;;  %v1553_v50 = vld [vmem:[%s2669_s1 + $0x70] sm:$0xf0]  ;;  %v2154_v53 = vor.u32 %v1777_v44, %v1551_v43 }
   0xd   :  { %251 = vmatpush.bf16.msra.mxu1 %v2092_v32  ;;  %277 = vmatpush.bf16.msra.mxu3 %v2094_v33  ;;  %v1776_v51 = vld [vmem:[%s2669_s1 + $0x6c] sm:$0xf]  ;;  %v1561_v52 = vld [vmem:[%s2669_s1 + $0x78] sm:$0xf0]  ;;  %v2156_v54 = vor.u32 %v1782_v49, %v1575_v48  ;;  %v1535_v55 = vld [vmem:[%s2669_s1 + $0x40] sm:$0xf]  ;;  %v2166_v57 = vor.u32 %v1775_v47, %v1553_v50 }
   0xe   :  { %v1773_v56 = vld [vmem:[%s2669_s1 + $0x4c] sm:$0xf0]  ;;  %v2168_v58 = vor.u32 %v1776_v51, %v1561_v52  ;;  %v1771_v59 = vld [vmem:[%s2669_s1 + $0x44] sm:$0xf]  ;;  %v1559_v60 = vld [vmem:[%s2669_s1 + $0x68] sm:$0xf] }
   0xf   :  { %v1778_v61 = vld [vmem:[%s2669_s1 + $0x74] sm:$0xf0]  ;;  %v1537_v62 = vld [vmem:[%s2669_s1 + $0x50] sm:$0xf0]  ;;  %v1772_v63 = vld [vmem:[%s2669_s1 + $0x4c] sm:$0xf]  ;;  %v2190_v1 = vor.u32 %v1773_v56, %v1535_v55 }
  0x10   :  { %239 = vmatpush.bf16.msra.mxu0 %v2118_v41  ;;  %264 = vmatpush.bf16.msra.mxu2 %v2120_v42  ;;  %v1545_v0 = vld [vmem:[%s2669_s1 + $0x58] sm:$0xf0]  ;;  %v2192_v2 = vor.u32 %v1778_v61, %v1559_v60  ;;  %v1519_v4 = vld [vmem:[%s2669_s1 + $0x20] sm:$0xf]  ;;  %v1769_v5 = vld [vmem:[%s2669_s1 + $0x2c] sm:$0xf0]  ;;  %v2202_v6 = vor.u32 %v1771_v59, %v1537_v62 }
  0x11   :  { %252 = vmatpush.bf16.msra.mxu1 %v2130_v45  ;;  %278 = vmatpush.bf16.msra.mxu3 %v2132_v46  ;;  %v2204_v9 = vor.u32 %v1772_v63, %v1545_v0  ;;  %v1767_v10 = vld [vmem:[%s2669_s1 + $0x24] sm:$0xf]  ;;  %v1543_v11 = vld [vmem:[%s2669_s1 + $0x48] sm:$0xf]  ;;  %v1774_v13 = vld [vmem:[%s2669_s1 + $0x54] sm:$0xf0]  ;;  %v2226_v19 = vor.u32 %v1769_v5, %v1519_v4 }
  0x12   :  { %v1521_v14 = vld [vmem:[%s2669_s1 + $0x30] sm:$0xf0]  ;;  %v1768_v15 = vld [vmem:[%s2669_s1 + $0x2c] sm:$0xf]  ;;  %v1529_v18 = vld [vmem:[%s2669_s1 + $0x38] sm:$0xf0]  ;;  %v2228_v20 = vor.u32 %v1774_v13, %v1543_v11 }
  0x13   :  { %v1503_v22 = vld [vmem:[%s2669_s1] sm:$0xf]  ;;  %v1765_v23 = vld [vmem:[%s2669_s1 + $0xc] sm:$0xf0]  ;;  %v2238_v24 = vor.u32 %v1767_v10, %v1521_v14  ;;  %v2240_v25 = vor.u32 %v1768_v15, %v1529_v18  ;;  %v1763_v26 = vld [vmem:[%s2669_s1 + $0x4] sm:$0xf] }
  0x14   :  { %240 = vmatpush.bf16.msra.mxu0 %v2154_v53  ;;  %265 = vmatpush.bf16.msra.mxu2 %v2156_v54  ;;  %v1527_v27 = vld [vmem:[%s2669_s1 + $0x28] sm:$0xf]  ;;  %v1770_v29 = vld [vmem:[%s2669_s1 + $0x34] sm:$0xf0]  ;;  %v1505_v30 = vld [vmem:[%s2669_s1 + $0x10] sm:$0xf0]  ;;  %v2262_v36 = vor.u32 %v1765_v23, %v1503_v22 }
  0x15   :  { %253 = vmatpush.bf16.msra.mxu1 %v2166_v57  ;;  %279 = vmatpush.bf16.msra.mxu3 %v2168_v58  ;;  %v1764_v31 = vld [vmem:[%s2669_s1 + $0xc] sm:$0xf]  ;;  %v1513_v35 = vld [vmem:[%s2669_s1 + $0x18] sm:$0xf0]  ;;  %v2264_v37 = vor.u32 %v1770_v29, %v1527_v27  ;;  %v2268_v38 = vor.u32 %v1763_v26, %v1505_v30  ;;  %v1511_v40 = vld [vmem:[%s2669_s1 + $0x8] sm:$0xf] }
  0x16   :  { %v2270_v39 = vor.u32 %v1764_v31, %v1513_v35  ;;  %v1766_v43 = vld [vmem:[%s2669_s1 + $0x14] sm:$0xf0]  ;;  %v1951_v47 = vmov 0.0|0.0   ;;  %v69_v48 = vld [vmem:[%s2670_s0] sm:$0xff]  ;;  %v70_v56 = vld [vmem:[%s2670_s0 + $0x8] sm:$0xff] }
  0x17   :  { %v2282_v44 = vor.u32 %v1766_v43, %v1511_v40  ;;  %v71_v49 = vunpack.c.l.bf16 %v69_v48  ;;  %v72_v50 = vunpack.c.h.bf16 %v69_v48  ;;  %v74_v62 = vunpack.c.h.bf16 %v70_v56 }
  0x18   :  { %241 = vmatpush.bf16.msra.mxu0 %v2190_v1  ;;  %266 = vmatpush.bf16.msra.mxu2 %v2192_v2  ;;  %v73_v22 = vunpack.c.l.bf16 %v70_v56 }
  0x19   :  { %254 = vmatpush.bf16.msra.mxu1 %v2202_v6  ;;  %280 = vmatpush.bf16.msra.mxu3 %v2204_v9 }
  0x1c   :  { %242 = vmatpush.bf16.msra.mxu0 %v2226_v19  ;;  %267 = vmatpush.bf16.msra.mxu2 %v2228_v20 }
  0x1d   :  { %255 = vmatpush.bf16.msra.mxu1 %v2238_v24  ;;  %281 = vmatpush.bf16.msra.mxu3 %v2240_v25 }
  0x20   :  { %243 = vmatpush.bf16.msra.mxu0 %v2262_v36  ;;  %268 = vmatpush.bf16.msra.mxu2 %v2264_v37 }
  0x21   :  { %256 = vmatpush.bf16.msra.mxu1 %v2268_v38  ;;  %282 = vmatpush.bf16.msra.mxu3 %v2270_v39 }
  0x23   :  { %244 = vmatmul.bf16.vlgmr.msra.gmra.mxu0 %v1951_v47 }
  0x24   :  { %363 = vmatpush.bf16.msrb.mxu0 %v2006_v3  ;;  %257 = vmatmul.bf16.vlgmr.msra.gmra.mxu1 %v1951_v47 }
  0x25   :  { %376 = vmatpush.bf16.msrb.mxu1 %v2017_v7  ;;  %402 = vmatpush.bf16.msrb.mxu3 %v2019_v8 }
  0x26   :  { %283 = vmatmul.bf16.vlgmr.msra.gmra.mxu3 %v1951_v47  ;;  %269 = vmatpush.bf16.msra.mxu2 %v2282_v44 }
  0x28   :  { %364 = vmatpush.bf16.msrb.mxu0 %v2031_v12 }
  0x29   :  { %377 = vmatpush.bf16.msrb.mxu1 %v2044_v16  ;;  %403 = vmatpush.bf16.msrb.mxu3 %v2046_v17 }
  0x2a   :  { %389 = vmatpush.bf16.msrb.mxu2 %v2057_v21 }
  0x2b   :  { %270 = vmatmul.bf16.vlgmr.msra.gmra.mxu2 %v1951_v47 }
  0x2c   :  { %365 = vmatpush.bf16.msrb.mxu0 %v2079_v28 }
  0x2d   :  { %378 = vmatpush.bf16.msrb.mxu1 %v2092_v32  ;;  %404 = vmatpush.bf16.msrb.mxu3 %v2094_v33 }
  0x2e   :  { %390 = vmatpush.bf16.msrb.mxu2 %v2096_v34 }
  0x30   :  { %366 = vmatpush.bf16.msrb.mxu0 %v2118_v41 }
  0x31   :  { %379 = vmatpush.bf16.msrb.mxu1 %v2130_v45  ;;  %405 = vmatpush.bf16.msrb.mxu3 %v2132_v46 }
  0x32   :  { %391 = vmatpush.bf16.msrb.mxu2 %v2120_v42 }
  0x34   :  { %367 = vmatpush.bf16.msrb.mxu0 %v2154_v53 }
  0x35   :  { %380 = vmatpush.bf16.msrb.mxu1 %v2166_v57  ;;  %406 = vmatpush.bf16.msrb.mxu3 %v2168_v58 }
  0x36   :  { %392 = vmatpush.bf16.msrb.mxu2 %v2156_v54 }
  0x38   :  { %368 = vmatpush.bf16.msrb.mxu0 %v2190_v1 }
  0x39   :  { %381 = vmatpush.bf16.msrb.mxu1 %v2202_v6  ;;  %407 = vmatpush.bf16.msrb.mxu3 %v2204_v9 }
  0x3a   :  { %393 = vmatpush.bf16.msrb.mxu2 %v2192_v2 }
  0x3c   :  { %369 = vmatpush.bf16.msrb.mxu0 %v2226_v19 }
  0x3d   :  { %382 = vmatpush.bf16.msrb.mxu1 %v2238_v24  ;;  %408 = vmatpush.bf16.msrb.mxu3 %v2240_v25 }
  0x3e   :  { %394 = vmatpush.bf16.msrb.mxu2 %v2228_v20 }
  0x40   :  { %370 = vmatpush.bf16.msrb.mxu0 %v2262_v36 }
  0x41   :  { %383 = vmatpush.bf16.msrb.mxu1 %v2268_v38  ;;  %409 = vmatpush.bf16.msrb.mxu3 %v2270_v39 }
  0x42   :  { %395 = vmatpush.bf16.msrb.mxu2 %v2264_v37 }
  0x44   :  { %490 = vmatpush.bf16.msra.mxu0 %v2006_v3 }
  0x45   :  { %503 = vmatpush.bf16.msra.mxu1 %v2017_v7  ;;  %529 = vmatpush.bf16.msra.mxu3 %v2019_v8 }
  0x46   :  { %396 = vmatpush.bf16.msrb.mxu2 %v2282_v44 }
  0x48   :  { %491 = vmatpush.bf16.msra.mxu0 %v2031_v12 }
  0x49   :  { %504 = vmatpush.bf16.msra.mxu1 %v2044_v16  ;;  %530 = vmatpush.bf16.msra.mxu3 %v2046_v17 }
  0x4a   :  { %516 = vmatpush.bf16.msra.mxu2 %v2057_v21 }
  0x4c   :  { %492 = vmatpush.bf16.msra.mxu0 %v2079_v28 }
  0x4d   :  { %505 = vmatpush.bf16.msra.mxu1 %v2092_v32  ;;  %531 = vmatpush.bf16.msra.mxu3 %v2094_v33 }
  0x4e   :  { %517 = vmatpush.bf16.msra.mxu2 %v2096_v34 }
  0x50   :  { %493 = vmatpush.bf16.msra.mxu0 %v2118_v41 }
  0x51   :  { %506 = vmatpush.bf16.msra.mxu1 %v2130_v45  ;;  %532 = vmatpush.bf16.msra.mxu3 %v2132_v46 }
  0x52   :  { %518 = vmatpush.bf16.msra.mxu2 %v2120_v42 }
  0x54   :  { %494 = vmatpush.bf16.msra.mxu0 %v2154_v53 }
  0x55   :  { %507 = vmatpush.bf16.msra.mxu1 %v2166_v57  ;;  %533 = vmatpush.bf16.msra.mxu3 %v2168_v58 }
  0x56   :  { %519 = vmatpush.bf16.msra.mxu2 %v2156_v54 }
  0x58   :  { %495 = vmatpush.bf16.msra.mxu0 %v2190_v1 }
  0x59   :  { %508 = vmatpush.bf16.msra.mxu1 %v2202_v6  ;;  %534 = vmatpush.bf16.msra.mxu3 %v2204_v9 }
  0x5a   :  { %520 = vmatpush.bf16.msra.mxu2 %v2192_v2 }
  0x5c   :  { %496 = vmatpush.bf16.msra.mxu0 %v2226_v19 }
  0x5d   :  { %509 = vmatpush.bf16.msra.mxu1 %v2238_v24  ;;  %535 = vmatpush.bf16.msra.mxu3 %v2240_v25 }
  0x5e   :  { %521 = vmatpush.bf16.msra.mxu2 %v2228_v20 }
  0x60   :  { %497 = vmatpush.bf16.msra.mxu0 %v2262_v36 }
  0x61   :  { %510 = vmatpush.bf16.msra.mxu1 %v2268_v38  ;;  %536 = vmatpush.bf16.msra.mxu3 %v2270_v39 }
  0x62   :  { %522 = vmatpush.bf16.msra.mxu2 %v2264_v37 }
  0x66   :  { %523 = vmatpush.bf16.msra.mxu2 %v2282_v44 }
  0xa0   :  { %v245_v51 = vpop.f32.mrf.mxu0 }
  0xa1   :  { %v288_v52 = vadd.f32 %v245_v51, %v71_v49  ;;  %v258_v55 = vpop.f32.mrf.mxu1 }
  0xa2   :  { %v289_v59 = vadd.f32 %v258_v55, %v72_v50 }
  0xa3   :  { %v1629_v60 = vmul.f32 -1.442695, %v288_v52 }
  0xa4   :  { %v1630_v61 = vmul.f32 -1.442695, %v289_v59 }
  0xa5   :  { %1823 = vpow2.f32 %v1629_v60 }
  0xa6   :  { %1825 = vpow2.f32 %v1630_v61 }
  0xa8   :  { %v247_v4 = vpop.f32.mrf.mxu0 }
  0xa9   :  { %v284_v63 = vpop.f32.mrf.mxu3  ;;  %v260_v5 = vpop.f32.mrf.mxu1 }
  0xaa   :  { %v291_v0 = vadd.f32 %v284_v63, %v74_v62 }
  0xab   :  { %v1824_v11 = vpop.eup %1823 }
  0xac   :  { %v1631_v10 = vmul.f32 -1.442695, %v291_v0  ;;  %v1826_v14 = vpop.eup %1825  ;;  %v295_v15 = vadd.f32 1.0, %v1824_v11 }
  0xad   :  { %v314_v18 = vadd.f32 1.0, %v1826_v14 }
  0xae   :  { %v271_v13 = vpop.f32.mrf.mxu2  ;;  %1827 = vpow2.f32 %v1631_v10  ;;  %v307_v49 = vand.u32 2147483648, %v295_v15  ;;  %v305_v52 = vand.u32 2147483647, %v295_v15  ;;  %vm301_vm2 = vweird.f32 %v295_v15 }
  0xaf   :  { %1829 = vrcp.f32 %v295_v15  ;;  %v290_v27 = vadd.f32 %v271_v13, %v73_v22  ;;  %v326_v50 = vand.u32 2147483648, %v314_v18  ;;  %v324_v56 = vand.u32 2147483647, %v314_v18 }
  0xb0   :  { %1831 = vrcp.f32 %v314_v18  ;;  %vm320_vm3 = vweird.f32 %v314_v18  ;;  %v308_v63 = vor.u32 1.1754944e-38, %v307_v49  ;;  %vm306_vm5 = vcmp.eq.f32.partialorder %v305_v52, 8.507059e+37 }
  0xb1   :  { %v286_v23 = vpop.f32.mrf.mxu3  ;;  %v327_v4 = vor.u32 1.1754944e-38, %v326_v50  ;;  %vm325_vm7 = vcmp.eq.f32.partialorder %v324_v56, 8.507059e+37 }
  0xb4   :  { %v1828_v26 = vpop.eup %1827 }
  0xb5   :  { %v334_v29 = vadd.f32 1.0, %v1828_v26  ;;  %v1830_v31 = vpop.eup %1829 }
  0xb6   :  { %v273_v30 = vpop.f32.mrf.mxu2  ;;  %v1832_v35 = vpop.eup %1831  ;;  %v297_v40 = vmul.f32 %v1830_v31, %v295_v15  ;;  %vm302_vm0 = vweird.f32 %v1830_v31 }
  0xb7   :  { %1833 = vrcp.f32 %v334_v29  ;;  %v316_v43 = vmul.f32 %v1832_v35, %v314_v18  ;;  %vm321_vm1 = vweird.f32 %v1832_v35  ;;  %vm303_vm4 = vmor %vm301_vm2, %vm302_vm0  ;;  %v346_v18 = vand.u32 2147483648, %v334_v29 }
  0xb8   :  { %1835 = vtanh.f32 %v290_v27  ;;  %v298_v47 = vsub.f32 1.0, %v297_v40  ;;  %vm322_vm6 = vmor %vm320_vm3, %vm321_vm1  ;;  %vm340_vm9 = vweird.f32 %v334_v29  ;;  %v344_v30 = vand.u32 2147483647, %v334_v29 }
  0xb9   :  { %v317_v48 = vsub.f32 1.0, %v316_v43  ;;  %v347_v40 = vor.u32 1.1754944e-38, %v346_v18 }
  0xba   :  { %v299_v51 = vmul.f32 %v1830_v31, %v298_v47  ;;  %vm345_vm11 = vcmp.eq.f32.partialorder %v344_v30, 8.507059e+37 }
  0xbb   :  { %v318_v55 = vmul.f32 %v1832_v35, %v317_v48 }
  0xbc   :  { %v300_v60 = vadd.f32 %v1830_v31, %v299_v51 }
  0xbd   :  { %v1834_v59 = vpop.eup %1833  ;;  %v319_v0 = vadd.f32 %v1832_v35, %v318_v55 }
  0xbe   :  { %v1836_v61 = vpop.eup %1835  ;;  %v336_v62 = vmul.f32 %v1834_v59, %v334_v29  ;;  %v304_v5 = vsel %vm303_vm4, %v1830_v31, %v300_v60  ;;  %vm341_vm8 = vweird.f32 %v1834_v59  ;;  %v1632_v29 = vld [vmem:[%s2670_s0 + $0x10] sm:$0xff] }
  0xbf   :  { %v309_v11 = vsel %vm306_vm5, %v308_v63, %v304_v5  ;;  %v323_v13 = vsel %vm322_vm6, %v1832_v35, %v319_v0  ;;  %vm342_vm10 = vmor %vm340_vm9, %vm341_vm8  ;;  %v358_v49 = vunpack.c.l.bf16 %v1632_v29  ;;  %v359_v50 = vunpack.c.h.bf16 %v1632_v29 }
  0xc0   :  { %v337_v10 = vsub.f32 1.0, %v336_v62  ;;  %v328_v14 = vsel %vm325_vm7, %v327_v4, %v323_v13  ;;  %v351_v22 = vmul.f32 %v1836_v61, %v309_v11 }
  0xc1   :  { %v350_v23 = vmul.f32 0.0, %v328_v14 }
  0xc2   :  { %v338_v26 = vmul.f32 %v1834_v59, %v337_v10 }
  0xc3   :  { %v2355_v27 = vadd.f32 %v351_v22, %v350_v23 }
  0xc4   :  { %v339_v15 = vadd.f32 %v1834_v59, %v338_v26 }
  0xc5   :  { %1837 = vtanh.f32 %v2355_v27 }
  0xc6   :  { %v343_v31 = vsel %vm342_vm10, %v1834_v59, %v339_v15  ;;  %v1633_v59 = vld [vmem:[%s2670_s0 + $0x18] sm:$0xff] }
  0xc7   :  { %v348_v35 = vsel %vm345_vm11, %v347_v40, %v343_v31  ;;  %v361_v62 = vunpack.c.h.bf16 %v1633_v59  ;;  %v360_v18 = vunpack.c.l.bf16 %v1633_v59 }
  0xcb   :  { %v1838_v43 = vpop.eup %1837 }
  0xcc   :  { %v354_v47 = vmul.f32 %v1838_v43, %v348_v35 }
  0xce   :  { %v362_v48 = vpack.c.bf16 %v354_v47, %v354_v47 }
  0xd0   :  { %371 = vmatmul.bf16.vlgmr.msrb.gmra.mxu0 %v362_v48  ;;  %384 = vmatmul.bf16.vlgmr.msrb.gmra.mxu1 %v362_v48 }
  0xd1   :  { %397 = vmatmul.bf16.vlgmr.msrb.gmra.mxu2 %v362_v48  ;;  %410 = vmatmul.bf16.vlgmr.msrb.gmra.mxu3 %v362_v48 }
  0xd2   :  { %617 = vmatpush.bf16.msrb.mxu0 %v2006_v3  ;;  %630 = vmatpush.bf16.msrb.mxu1 %v2017_v7 }
  0xd3   :  { %643 = vmatpush.bf16.msrb.mxu2 %v2057_v21  ;;  %656 = vmatpush.bf16.msrb.mxu3 %v2019_v8 }
  0xd6   :  { %618 = vmatpush.bf16.msrb.mxu0 %v2031_v12  ;;  %631 = vmatpush.bf16.msrb.mxu1 %v2044_v16 }
  0xd7   :  { %644 = vmatpush.bf16.msrb.mxu2 %v2096_v34  ;;  %657 = vmatpush.bf16.msrb.mxu3 %v2046_v17 }
  0xda   :  { %619 = vmatpush.bf16.msrb.mxu0 %v2079_v28  ;;  %632 = vmatpush.bf16.msrb.mxu1 %v2092_v32 }
  0xdb   :  { %645 = vmatpush.bf16.msrb.mxu2 %v2120_v42  ;;  %658 = vmatpush.bf16.msrb.mxu3 %v2094_v33 }
  0xde   :  { %620 = vmatpush.bf16.msrb.mxu0 %v2118_v41  ;;  %633 = vmatpush.bf16.msrb.mxu1 %v2130_v45 }
  0xdf   :  { %646 = vmatpush.bf16.msrb.mxu2 %v2156_v54  ;;  %659 = vmatpush.bf16.msrb.mxu3 %v2132_v46 }
  0xe2   :  { %621 = vmatpush.bf16.msrb.mxu0 %v2154_v53  ;;  %634 = vmatpush.bf16.msrb.mxu1 %v2166_v57 }
  0xe3   :  { %647 = vmatpush.bf16.msrb.mxu2 %v2192_v2  ;;  %660 = vmatpush.bf16.msrb.mxu3 %v2168_v58 }
  0xe6   :  { %622 = vmatpush.bf16.msrb.mxu0 %v2190_v1  ;;  %635 = vmatpush.bf16.msrb.mxu1 %v2202_v6 }
  0xe7   :  { %648 = vmatpush.bf16.msrb.mxu2 %v2228_v20  ;;  %661 = vmatpush.bf16.msrb.mxu3 %v2204_v9 }
  0xea   :  { %623 = vmatpush.bf16.msrb.mxu0 %v2226_v19  ;;  %636 = vmatpush.bf16.msrb.mxu1 %v2238_v24 }
  0xeb   :  { %649 = vmatpush.bf16.msrb.mxu2 %v2264_v37  ;;  %662 = vmatpush.bf16.msrb.mxu3 %v2240_v25 }
  0xee   :  { %624 = vmatpush.bf16.msrb.mxu0 %v2262_v36  ;;  %637 = vmatpush.bf16.msrb.mxu1 %v2268_v38 }
  0xef   :  { %650 = vmatpush.bf16.msrb.mxu2 %v2282_v44  ;;  %663 = vmatpush.bf16.msrb.mxu3 %v2270_v39 }
 0x14d   :  { %v372_v51 = vpop.f32.mrf.mxu0  ;;  %v385_v52 = vpop.f32.mrf.mxu1 }
 0x14e   :  { %v415_v55 = vadd.f32 %v372_v51, %v358_v49  ;;  %v416_v56 = vadd.f32 %v385_v52, %v359_v50 }
 0x150   :  { %v1634_v60 = vmul.f32 -1.442695, %v415_v55  ;;  %v1635_v61 = vmul.f32 -1.442695, %v416_v56 }
 0x152   :  { %1839 = vpow2.f32 %v1634_v60 }
 0x153   :  { %1841 = vpow2.f32 %v1635_v61 }
 0x154   :  { %v398_v63 = vpop.f32.mrf.mxu2  ;;  %v411_v0 = vpop.f32.mrf.mxu3 }
 0x155   :  { %v418_v4 = vadd.f32 %v411_v0, %v361_v62  ;;  %v374_v5 = vpop.f32.mrf.mxu0  ;;  %v387_v10 = vpop.f32.mrf.mxu1  ;;  %v417_v43 = vadd.f32 %v398_v63, %v360_v18 }
 0x157   :  { %v1636_v11 = vmul.f32 -1.442695, %v418_v4 }
 0x158   :  { %v1840_v13 = vpop.eup %1839 }
 0x159   :  { %v1842_v14 = vpop.eup %1841  ;;  %v422_v22 = vadd.f32 1.0, %v1840_v13  ;;  %1843 = vpow2.f32 %v1636_v11 }
 0x15a   :  { %v441_v23 = vadd.f32 1.0, %v1842_v14 }
 0x15b   :  { %1845 = vrcp.f32 %v422_v22  ;;  %v434_v50 = vand.u32 2147483648, %v422_v22  ;;  %v432_v55 = vand.u32 2147483647, %v422_v22  ;;  %vm428_vm14 = vweird.f32 %v422_v22 }
 0x15c   :  { %1847 = vrcp.f32 %v441_v23  ;;  %v400_v26 = vpop.f32.mrf.mxu2  ;;  %v413_v15 = vpop.f32.mrf.mxu3  ;;  %v453_v51 = vand.u32 2147483648, %v441_v23  ;;  %v451_v60 = vand.u32 2147483647, %v441_v23  ;;  %vm447_vm15 = vweird.f32 %v441_v23 }
 0x15d   :  { %v435_v62 = vor.u32 1.1754944e-38, %v434_v50  ;;  %vm433_vm2 = vcmp.eq.f32.partialorder %v432_v55, 8.507059e+37 }
 0x15e   :  { %v454_v4 = vor.u32 1.1754944e-38, %v453_v51  ;;  %vm452_vm3 = vcmp.eq.f32.partialorder %v451_v60, 8.507059e+37 }
 0x15f   :  { %v1844_v30 = vpop.eup %1843 }
 0x160   :  { %v461_v31 = vadd.f32 1.0, %v1844_v30 }
 0x161   :  { %v1846_v40 = vpop.eup %1845 }
 0x162   :  { %v1848_v35 = vpop.eup %1847  ;;  %v424_v47 = vmul.f32 %v1846_v40, %v422_v22  ;;  %1849 = vrcp.f32 %v461_v31  ;;  %vm429_vm12 = vweird.f32 %v1846_v40  ;;  %vm467_vm5 = vweird.f32 %v461_v31 }
 0x163   :  { %v443_v48 = vmul.f32 %v1848_v35, %v441_v23  ;;  %1851 = vtanh.f32 %v417_v43  ;;  %vm448_vm13 = vweird.f32 %v1848_v35  ;;  %vm430_vm0 = vmor %vm428_vm14, %vm429_vm12  ;;  %v473_v43 = vand.u32 2147483648, %v461_v31 }
 0x164   :  { %v425_v29 = vsub.f32 1.0, %v424_v47  ;;  %vm449_vm1 = vmor %vm447_vm15, %vm448_vm13 }
 0x165   :  { %v444_v49 = vsub.f32 1.0, %v443_v48  ;;  %v474_v48 = vor.u32 1.1754944e-38, %v473_v43 }
 0x166   :  { %v426_v52 = vmul.f32 %v1846_v40, %v425_v29 }
 0x167   :  { %v445_v56 = vmul.f32 %v1848_v35, %v444_v49 }
 0x168   :  { %v1850_v59 = vpop.eup %1849  ;;  %v427_v61 = vadd.f32 %v1846_v40, %v426_v52 }
 0x169   :  { %v446_v63 = vadd.f32 %v1848_v35, %v445_v56  ;;  %v463_v0 = vmul.f32 %v1850_v59, %v461_v31  ;;  %v1852_v10 = vpop.eup %1851  ;;  %vm468_vm4 = vweird.f32 %v1850_v59 }
 0x16a   :  { %v431_v5 = vsel %vm430_vm0, %v1846_v40, %v427_v61  ;;  %v471_v40 = vand.u32 2147483647, %v461_v31  ;;  %vm469_vm6 = vmor %vm467_vm5, %vm468_vm4 }
 0x16b   :  { %v436_v11 = vsel %vm433_vm2, %v435_v62, %v431_v5  ;;  %v450_v13 = vsel %vm449_vm1, %v1848_v35, %v446_v63  ;;  %v464_v14 = vsub.f32 1.0, %v463_v0 }
 0x16c   :  { %v455_v26 = vsel %vm452_vm3, %v454_v4, %v450_v13  ;;  %v478_v15 = vmul.f32 %v1852_v10, %v436_v11  ;;  %vm472_vm7 = vcmp.eq.f32.partialorder %v471_v40, 8.507059e+37 }
 0x16d   :  { %v477_v18 = vmul.f32 %v455_v26, %v2355_v27  ;;  %v465_v30 = vmul.f32 %v1850_v59, %v464_v14  ;;  %v1637_v27 = vld [vmem:[%s2670_s0 + $0x20] sm:$0xff] }
 0x16e   :  { %v485_v31 = vunpack.c.l.bf16 %v1637_v27  ;;  %v486_v51 = vunpack.c.h.bf16 %v1637_v27 }
 0x16f   :  { %v2397_v22 = vadd.f32 %v478_v15, %v477_v18  ;;  %v466_v23 = vadd.f32 %v1850_v59, %v465_v30 }
 0x171   :  { %1853 = vtanh.f32 %v2397_v22  ;;  %v470_v47 = vsel %vm469_vm6, %v1850_v59, %v466_v23  ;;  %v1638_v59 = vld [vmem:[%s2670_s0 + $0x28] sm:$0xff] }
 0x172   :  { %v475_v29 = vsel %vm472_vm7, %v474_v48, %v470_v47  ;;  %v488_v63 = vunpack.c.h.bf16 %v1638_v59  ;;  %v487_v43 = vunpack.c.l.bf16 %v1638_v59 }
 0x177   :  { %v1854_v35 = vpop.eup %1853 }
 0x178   :  { %v481_v49 = vmul.f32 %v1854_v35, %v475_v29 }
 0x17a   :  { %v489_v50 = vpack.c.bf16 %v481_v49, %v481_v49 }
 0x17c   :  { %498 = vmatmul.bf16.vlgmr.msra.gmra.mxu0 %v489_v50  ;;  %511 = vmatmul.bf16.vlgmr.msra.gmra.mxu1 %v489_v50 }
 0x17d   :  { %524 = vmatmul.bf16.vlgmr.msra.gmra.mxu2 %v489_v50  ;;  %537 = vmatmul.bf16.vlgmr.msra.gmra.mxu3 %v489_v50 }
 0x17e   :  { %744 = vmatpush.bf16.msra.mxu0 %v2006_v3  ;;  %757 = vmatpush.bf16.msra.mxu1 %v2017_v7 }
 0x17f   :  { %770 = vmatpush.bf16.msra.mxu2 %v2057_v21  ;;  %783 = vmatpush.bf16.msra.mxu3 %v2019_v8 }
 0x182   :  { %745 = vmatpush.bf16.msra.mxu0 %v2031_v12  ;;  %758 = vmatpush.bf16.msra.mxu1 %v2044_v16 }
 0x183   :  { %771 = vmatpush.bf16.msra.mxu2 %v2096_v34  ;;  %784 = vmatpush.bf16.msra.mxu3 %v2046_v17 }
 0x186   :  { %746 = vmatpush.bf16.msra.mxu0 %v2079_v28  ;;  %759 = vmatpush.bf16.msra.mxu1 %v2092_v32 }
 0x187   :  { %772 = vmatpush.bf16.msra.mxu2 %v2120_v42  ;;  %785 = vmatpush.bf16.msra.mxu3 %v2094_v33 }
 0x18a   :  { %747 = vmatpush.bf16.msra.mxu0 %v2118_v41  ;;  %760 = vmatpush.bf16.msra.mxu1 %v2130_v45 }
 0x18b   :  { %773 = vmatpush.bf16.msra.mxu2 %v2156_v54  ;;  %786 = vmatpush.bf16.msra.mxu3 %v2132_v46 }
 0x18e   :  { %748 = vmatpush.bf16.msra.mxu0 %v2154_v53  ;;  %761 = vmatpush.bf16.msra.mxu1 %v2166_v57 }
 0x18f   :  { %774 = vmatpush.bf16.msra.mxu2 %v2192_v2  ;;  %787 = vmatpush.bf16.msra.mxu3 %v2168_v58 }
 0x192   :  { %749 = vmatpush.bf16.msra.mxu0 %v2190_v1  ;;  %762 = vmatpush.bf16.msra.mxu1 %v2202_v6 }
 0x193   :  { %775 = vmatpush.bf16.msra.mxu2 %v2228_v20  ;;  %788 = vmatpush.bf16.msra.mxu3 %v2204_v9 }
 0x196   :  { %750 = vmatpush.bf16.msra.mxu0 %v2226_v19  ;;  %763 = vmatpush.bf16.msra.mxu1 %v2238_v24 }
 0x197   :  { %776 = vmatpush.bf16.msra.mxu2 %v2264_v37  ;;  %789 = vmatpush.bf16.msra.mxu3 %v2240_v25 }
 0x19a   :  { %751 = vmatpush.bf16.msra.mxu0 %v2262_v36  ;;  %764 = vmatpush.bf16.msra.mxu1 %v2268_v38 }
 0x19b   :  { %777 = vmatpush.bf16.msra.mxu2 %v2282_v44  ;;  %790 = vmatpush.bf16.msra.mxu3 %v2270_v39 }
 0x1f9   :  { %v499_v52 = vpop.f32.mrf.mxu0  ;;  %v512_v55 = vpop.f32.mrf.mxu1 }
 0x1fa   :  { %v542_v56 = vadd.f32 %v499_v52, %v485_v31  ;;  %v543_v60 = vadd.f32 %v512_v55, %v486_v51 }
 0x1fc   :  { %v1639_v61 = vmul.f32 -1.442695, %v542_v56  ;;  %v1640_v62 = vmul.f32 -1.442695, %v543_v60 }
 0x1fe   :  { %1855 = vpow2.f32 %v1639_v61 }
 0x1ff   :  { %1857 = vpow2.f32 %v1640_v62 }
 0x200   :  { %v525_v0 = vpop.f32.mrf.mxu2  ;;  %v538_v4 = vpop.f32.mrf.mxu3 }
 0x201   :  { %v545_v5 = vadd.f32 %v538_v4, %v488_v63  ;;  %v501_v10 = vpop.f32.mrf.mxu0  ;;  %v514_v11 = vpop.f32.mrf.mxu1  ;;  %v544_v35 = vadd.f32 %v525_v0, %v487_v43 }
 0x203   :  { %v1641_v13 = vmul.f32 -1.442695, %v545_v5 }
 0x204   :  { %v1856_v14 = vpop.eup %1855 }
 0x205   :  { %v1858_v26 = vpop.eup %1857  ;;  %v549_v15 = vadd.f32 1.0, %v1856_v14  ;;  %1859 = vpow2.f32 %v1641_v13 }
 0x206   :  { %v568_v18 = vadd.f32 1.0, %v1858_v26 }
 0x207   :  { %1861 = vrcp.f32 %v549_v15  ;;  %v561_v51 = vand.u32 2147483648, %v549_v15  ;;  %v559_v56 = vand.u32 2147483647, %v549_v15  ;;  %vm555_vm10 = vweird.f32 %v549_v15 }
 0x208   :  { %1863 = vrcp.f32 %v568_v18  ;;  %v527_v30 = vpop.f32.mrf.mxu2  ;;  %v540_v23 = vpop.f32.mrf.mxu3  ;;  %v580_v52 = vand.u32 2147483648, %v568_v18  ;;  %v578_v61 = vand.u32 2147483647, %v568_v18  ;;  %vm574_vm11 = vweird.f32 %v568_v18 }
 0x209   :  { %v562_v63 = vor.u32 1.1754944e-38, %v561_v51  ;;  %vm560_vm14 = vcmp.eq.f32.partialorder %v559_v56, 8.507059e+37 }
 0x20a   :  { %v581_v5 = vor.u32 1.1754944e-38, %v580_v52  ;;  %vm579_vm15 = vcmp.eq.f32.partialorder %v578_v61, 8.507059e+37 }
 0x20b   :  { %v1860_v40 = vpop.eup %1859 }
 0x20c   :  { %v588_v47 = vadd.f32 1.0, %v1860_v40 }
 0x20d   :  { %v1862_v48 = vpop.eup %1861 }
 0x20e   :  { %v1864_v29 = vpop.eup %1863  ;;  %v551_v49 = vmul.f32 %v1862_v48, %v549_v15  ;;  %1865 = vrcp.f32 %v588_v47  ;;  %vm556_vm8 = vweird.f32 %v1862_v48  ;;  %vm594_vm1 = vweird.f32 %v588_v47 }
 0x20f   :  { %v570_v50 = vmul.f32 %v1864_v29, %v568_v18  ;;  %1867 = vtanh.f32 %v544_v35  ;;  %vm575_vm9 = vweird.f32 %v1864_v29  ;;  %vm557_vm12 = vmor %vm555_vm10, %vm556_vm8  ;;  %v600_v35 = vand.u32 2147483648, %v588_v47 }
 0x210   :  { %v552_v27 = vsub.f32 1.0, %v551_v49  ;;  %vm576_vm13 = vmor %vm574_vm11, %vm575_vm9 }
 0x211   :  { %v571_v31 = vsub.f32 1.0, %v570_v50  ;;  %v601_v50 = vor.u32 1.1754944e-38, %v600_v35 }
 0x212   :  { %v553_v55 = vmul.f32 %v1862_v48, %v552_v27 }
 0x213   :  { %v572_v60 = vmul.f32 %v1864_v29, %v571_v31 }
 0x214   :  { %v1866_v59 = vpop.eup %1865  ;;  %v554_v62 = vadd.f32 %v1862_v48, %v553_v55 }
 0x215   :  { %v573_v0 = vadd.f32 %v1864_v29, %v572_v60  ;;  %v590_v4 = vmul.f32 %v1866_v59, %v588_v47  ;;  %v1868_v11 = vpop.eup %1867  ;;  %vm595_vm0 = vweird.f32 %v1866_v59 }
 0x216   :  { %v558_v10 = vsel %vm557_vm12, %v1862_v48, %v554_v62  ;;  %v598_v48 = vand.u32 2147483647, %v588_v47  ;;  %vm596_vm2 = vmor %vm594_vm1, %vm595_vm0 }
 0x217   :  { %v563_v13 = vsel %vm560_vm14, %v562_v63, %v558_v10  ;;  %v577_v14 = vsel %vm576_vm13, %v1864_v29, %v573_v0  ;;  %v591_v26 = vsub.f32 1.0, %v590_v4 }
 0x218   :  { %v582_v30 = vsel %vm579_vm15, %v581_v5, %v577_v14  ;;  %v605_v23 = vmul.f32 %v1868_v11, %v563_v13  ;;  %vm599_vm3 = vcmp.eq.f32.partialorder %v598_v48, 8.507059e+37 }
 0x219   :  { %v604_v43 = vmul.f32 %v582_v30, %v2397_v22  ;;  %v592_v40 = vmul.f32 %v1866_v59, %v591_v26  ;;  %v1642_v22 = vld [vmem:[%s2670_s0 + $0x30] sm:$0xff] }
 0x21a   :  { %v612_v47 = vunpack.c.l.bf16 %v1642_v22  ;;  %v613_v52 = vunpack.c.h.bf16 %v1642_v22 }
 0x21b   :  { %v2439_v15 = vadd.f32 %v605_v23, %v604_v43  ;;  %v593_v18 = vadd.f32 %v1866_v59, %v592_v40 }
 0x21d   :  { %1869 = vtanh.f32 %v2439_v15  ;;  %v597_v49 = vsel %vm596_vm2, %v1866_v59, %v593_v18  ;;  %v1643_v59 = vld [vmem:[%s2670_s0 + $0x38] sm:$0xff] }
 0x21e   :  { %v602_v27 = vsel %vm599_vm3, %v601_v50, %v597_v49  ;;  %v615_v0 = vunpack.c.h.bf16 %v1643_v59  ;;  %v614_v35 = vunpack.c.l.bf16 %v1643_v59 }
 0x223   :  { %v1870_v29 = vpop.eup %1869 }
 0x224   :  { %v608_v31 = vmul.f32 %v1870_v29, %v602_v27 }
 0x226   :  { %v616_v51 = vpack.c.bf16 %v608_v31, %v608_v31 }
 0x228   :  { %625 = vmatmul.bf16.vlgmr.msrb.gmra.mxu0 %v616_v51  ;;  %638 = vmatmul.bf16.vlgmr.msrb.gmra.mxu1 %v616_v51 }
 0x229   :  { %651 = vmatmul.bf16.vlgmr.msrb.gmra.mxu2 %v616_v51  ;;  %664 = vmatmul.bf16.vlgmr.msrb.gmra.mxu3 %v616_v51 }
 0x22a   :  { %871 = vmatpush.bf16.msrb.mxu0 %v2006_v3  ;;  %884 = vmatpush.bf16.msrb.mxu1 %v2017_v7 }
 0x22b   :  { %897 = vmatpush.bf16.msrb.mxu2 %v2057_v21  ;;  %910 = vmatpush.bf16.msrb.mxu3 %v2019_v8 }
 0x22e   :  { %872 = vmatpush.bf16.msrb.mxu0 %v2031_v12  ;;  %885 = vmatpush.bf16.msrb.mxu1 %v2044_v16 }
 0x22f   :  { %898 = vmatpush.bf16.msrb.mxu2 %v2096_v34  ;;  %911 = vmatpush.bf16.msrb.mxu3 %v2046_v17 }
 0x232   :  { %873 = vmatpush.bf16.msrb.mxu0 %v2079_v28  ;;  %886 = vmatpush.bf16.msrb.mxu1 %v2092_v32 }
 0x233   :  { %899 = vmatpush.bf16.msrb.mxu2 %v2120_v42  ;;  %912 = vmatpush.bf16.msrb.mxu3 %v2094_v33 }
 0x236   :  { %874 = vmatpush.bf16.msrb.mxu0 %v2118_v41  ;;  %887 = vmatpush.bf16.msrb.mxu1 %v2130_v45 }
 0x237   :  { %900 = vmatpush.bf16.msrb.mxu2 %v2156_v54  ;;  %913 = vmatpush.bf16.msrb.mxu3 %v2132_v46 }
 0x23a   :  { %875 = vmatpush.bf16.msrb.mxu0 %v2154_v53  ;;  %888 = vmatpush.bf16.msrb.mxu1 %v2166_v57 }
 0x23b   :  { %901 = vmatpush.bf16.msrb.mxu2 %v2192_v2  ;;  %914 = vmatpush.bf16.msrb.mxu3 %v2168_v58 }
 0x23e   :  { %876 = vmatpush.bf16.msrb.mxu0 %v2190_v1  ;;  %889 = vmatpush.bf16.msrb.mxu1 %v2202_v6 }
 0x23f   :  { %902 = vmatpush.bf16.msrb.mxu2 %v2228_v20  ;;  %915 = vmatpush.bf16.msrb.mxu3 %v2204_v9 }
 0x242   :  { %877 = vmatpush.bf16.msrb.mxu0 %v2226_v19  ;;  %890 = vmatpush.bf16.msrb.mxu1 %v2238_v24 }
 0x243   :  { %903 = vmatpush.bf16.msrb.mxu2 %v2264_v37  ;;  %916 = vmatpush.bf16.msrb.mxu3 %v2240_v25 }
 0x246   :  { %878 = vmatpush.bf16.msrb.mxu0 %v2262_v36  ;;  %891 = vmatpush.bf16.msrb.mxu1 %v2268_v38 }
 0x247   :  { %904 = vmatpush.bf16.msrb.mxu2 %v2282_v44  ;;  %917 = vmatpush.bf16.msrb.mxu3 %v2270_v39 }
 0x2a5   :  { %v626_v55 = vpop.f32.mrf.mxu0  ;;  %v639_v56 = vpop.f32.mrf.mxu1 }
 0x2a6   :  { %v669_v60 = vadd.f32 %v626_v55, %v612_v47  ;;  %v670_v61 = vadd.f32 %v639_v56, %v613_v52 }
 0x2a8   :  { %v1644_v62 = vmul.f32 -1.442695, %v669_v60  ;;  %v1645_v63 = vmul.f32 -1.442695, %v670_v61 }
 0x2aa   :  { %1871 = vpow2.f32 %v1644_v62 }
 0x2ab   :  { %1873 = vpow2.f32 %v1645_v63 }
 0x2ac   :  { %v652_v4 = vpop.f32.mrf.mxu2  ;;  %v665_v5 = vpop.f32.mrf.mxu3 }
 0x2ad   :  { %v672_v10 = vadd.f32 %v665_v5, %v615_v0  ;;  %v628_v11 = vpop.f32.mrf.mxu0  ;;  %v641_v13 = vpop.f32.mrf.mxu1  ;;  %v671_v29 = vadd.f32 %v652_v4, %v614_v35 }
 0x2af   :  { %v1646_v14 = vmul.f32 -1.442695, %v672_v10 }
 0x2b0   :  { %v1872_v26 = vpop.eup %1871 }
 0x2b1   :  { %v1874_v30 = vpop.eup %1873  ;;  %v676_v23 = vadd.f32 1.0, %v1872_v26  ;;  %1875 = vpow2.f32 %v1646_v14 }
 0x2b2   :  { %v695_v43 = vadd.f32 1.0, %v1874_v30 }
 0x2b3   :  { %1877 = vrcp.f32 %v676_v23  ;;  %v688_v52 = vand.u32 2147483648, %v676_v23  ;;  %v686_v60 = vand.u32 2147483647, %v676_v23  ;;  %vm682_vm6 = vweird.f32 %v676_v23 }
 0x2b4   :  { %1879 = vrcp.f32 %v695_v43  ;;  %v654_v40 = vpop.f32.mrf.mxu2  ;;  %v667_v18 = vpop.f32.mrf.mxu3  ;;  %v707_v55 = vand.u32 2147483648, %v695_v43  ;;  %v705_v62 = vand.u32 2147483647, %v695_v43  ;;  %vm701_vm7 = vweird.f32 %v695_v43 }
 0x2b5   :  { %v689_v0 = vor.u32 1.1754944e-38, %v688_v52  ;;  %vm687_vm10 = vcmp.eq.f32.partialorder %v686_v60, 8.507059e+37 }
 0x2b6   :  { %v708_v10 = vor.u32 1.1754944e-38, %v707_v55  ;;  %vm706_vm11 = vcmp.eq.f32.partialorder %v705_v62, 8.507059e+37 }
 0x2b7   :  { %v1876_v48 = vpop.eup %1875 }
 0x2b8   :  { %v715_v49 = vadd.f32 1.0, %v1876_v48 }
 0x2b9   :  { %v1878_v50 = vpop.eup %1877 }
 0x2ba   :  { %v1880_v27 = vpop.eup %1879  ;;  %v678_v31 = vmul.f32 %v1878_v50, %v676_v23  ;;  %1881 = vrcp.f32 %v715_v49  ;;  %vm683_vm4 = vweird.f32 %v1878_v50  ;;  %vm721_vm13 = vweird.f32 %v715_v49 }
 0x2bb   :  { %v697_v51 = vmul.f32 %v1880_v27, %v695_v43  ;;  %1883 = vtanh.f32 %v671_v29  ;;  %vm702_vm5 = vweird.f32 %v1880_v27  ;;  %vm684_vm8 = vmor %vm682_vm6, %vm683_vm4  ;;  %v727_v29 = vand.u32 2147483648, %v715_v49 }
 0x2bc   :  { %v679_v22 = vsub.f32 1.0, %v678_v31  ;;  %vm703_vm9 = vmor %vm701_vm7, %vm702_vm5 }
 0x2bd   :  { %v698_v47 = vsub.f32 1.0, %v697_v51  ;;  %v728_v51 = vor.u32 1.1754944e-38, %v727_v29 }
 0x2be   :  { %v680_v56 = vmul.f32 %v1878_v50, %v679_v22 }
 0x2bf   :  { %v699_v61 = vmul.f32 %v1880_v27, %v698_v47 }
 0x2c0   :  { %v1882_v59 = vpop.eup %1881  ;;  %v681_v63 = vadd.f32 %v1878_v50, %v680_v56 }
 0x2c1   :  { %v700_v4 = vadd.f32 %v1880_v27, %v699_v61  ;;  %v717_v5 = vmul.f32 %v1882_v59, %v715_v49  ;;  %v1884_v13 = vpop.eup %1883  ;;  %vm722_vm12 = vweird.f32 %v1882_v59 }
 0x2c2   :  { %v685_v11 = vsel %vm684_vm8, %v1878_v50, %v681_v63  ;;  %v725_v50 = vand.u32 2147483647, %v715_v49  ;;  %vm723_vm14 = vmor %vm721_vm13, %vm722_vm12 }
 0x2c3   :  { %v690_v14 = vsel %vm687_vm10, %v689_v0, %v685_v11  ;;  %v704_v26 = vsel %vm703_vm9, %v1880_v27, %v700_v4  ;;  %v718_v30 = vsub.f32 1.0, %v717_v5 }
 0x2c4   :  { %v709_v40 = vsel %vm706_vm11, %v708_v10, %v704_v26  ;;  %v732_v18 = vmul.f32 %v1884_v13, %v690_v14  ;;  %vm726_vm15 = vcmp.eq.f32.partialorder %v725_v50, 8.507059e+37 }
 0x2c5   :  { %v731_v35 = vmul.f32 %v709_v40, %v2439_v15  ;;  %v719_v48 = vmul.f32 %v1882_v59, %v718_v30  ;;  %v1647_v15 = vld [vmem:[%s2670_s0 + $0x40] sm:$0xff] }
 0x2c6   :  { %v739_v49 = vunpack.c.l.bf16 %v1647_v15  ;;  %v740_v55 = vunpack.c.h.bf16 %v1647_v15 }
 0x2c7   :  { %v2481_v23 = vadd.f32 %v732_v18, %v731_v35  ;;  %v720_v43 = vadd.f32 %v1882_v59, %v719_v48 }
 0x2c9   :  { %1885 = vtanh.f32 %v2481_v23  ;;  %v724_v31 = vsel %vm723_vm14, %v1882_v59, %v720_v43  ;;  %v1648_v59 = vld [vmem:[%s2670_s0 + $0x48] sm:$0xff] }
 0x2ca   :  { %v729_v22 = vsel %vm726_vm15, %v728_v51, %v724_v31  ;;  %v742_v4 = vunpack.c.h.bf16 %v1648_v59  ;;  %v741_v29 = vunpack.c.l.bf16 %v1648_v59 }
 0x2cf   :  { %v1886_v27 = vpop.eup %1885 }
 0x2d0   :  { %v735_v47 = vmul.f32 %v1886_v27, %v729_v22 }
 0x2d2   :  { %v743_v52 = vpack.c.bf16 %v735_v47, %v735_v47 }
 0x2d4   :  { %752 = vmatmul.bf16.vlgmr.msra.gmra.mxu0 %v743_v52  ;;  %765 = vmatmul.bf16.vlgmr.msra.gmra.mxu1 %v743_v52 }
 0x2d5   :  { %778 = vmatmul.bf16.vlgmr.msra.gmra.mxu2 %v743_v52  ;;  %791 = vmatmul.bf16.vlgmr.msra.gmra.mxu3 %v743_v52 }
 0x2d6   :  { %998 = vmatpush.bf16.msra.mxu0 %v2006_v3  ;;  %1011 = vmatpush.bf16.msra.mxu1 %v2017_v7 }
 0x2d7   :  { %1024 = vmatpush.bf16.msra.mxu2 %v2057_v21  ;;  %1037 = vmatpush.bf16.msra.mxu3 %v2019_v8 }
 0x2da   :  { %999 = vmatpush.bf16.msra.mxu0 %v2031_v12  ;;  %1012 = vmatpush.bf16.msra.mxu1 %v2044_v16 }
 0x2db   :  { %1025 = vmatpush.bf16.msra.mxu2 %v2096_v34  ;;  %1038 = vmatpush.bf16.msra.mxu3 %v2046_v17 }
 0x2de   :  { %1000 = vmatpush.bf16.msra.mxu0 %v2079_v28  ;;  %1013 = vmatpush.bf16.msra.mxu1 %v2092_v32 }
 0x2df   :  { %1026 = vmatpush.bf16.msra.mxu2 %v2120_v42  ;;  %1039 = vmatpush.bf16.msra.mxu3 %v2094_v33 }
 0x2e2   :  { %1001 = vmatpush.bf16.msra.mxu0 %v2118_v41  ;;  %1014 = vmatpush.bf16.msra.mxu1 %v2130_v45 }
 0x2e3   :  { %1027 = vmatpush.bf16.msra.mxu2 %v2156_v54  ;;  %1040 = vmatpush.bf16.msra.mxu3 %v2132_v46 }
 0x2e6   :  { %1002 = vmatpush.bf16.msra.mxu0 %v2154_v53  ;;  %1015 = vmatpush.bf16.msra.mxu1 %v2166_v57 }
 0x2e7   :  { %1028 = vmatpush.bf16.msra.mxu2 %v2192_v2  ;;  %1041 = vmatpush.bf16.msra.mxu3 %v2168_v58 }
 0x2ea   :  { %1003 = vmatpush.bf16.msra.mxu0 %v2190_v1  ;;  %1016 = vmatpush.bf16.msra.mxu1 %v2202_v6 }
 0x2eb   :  { %1029 = vmatpush.bf16.msra.mxu2 %v2228_v20  ;;  %1042 = vmatpush.bf16.msra.mxu3 %v2204_v9 }
 0x2ee   :  { %1004 = vmatpush.bf16.msra.mxu0 %v2226_v19  ;;  %1017 = vmatpush.bf16.msra.mxu1 %v2238_v24 }
 0x2ef   :  { %1030 = vmatpush.bf16.msra.mxu2 %v2264_v37  ;;  %1043 = vmatpush.bf16.msra.mxu3 %v2240_v25 }
 0x2f2   :  { %1005 = vmatpush.bf16.msra.mxu0 %v2262_v36  ;;  %1018 = vmatpush.bf16.msra.mxu1 %v2268_v38 }
 0x2f3   :  { %1031 = vmatpush.bf16.msra.mxu2 %v2282_v44  ;;  %1044 = vmatpush.bf16.msra.mxu3 %v2270_v39 }
 0x351   :  { %v753_v56 = vpop.f32.mrf.mxu0  ;;  %v766_v60 = vpop.f32.mrf.mxu1 }
 0x352   :  { %v796_v61 = vadd.f32 %v753_v56, %v739_v49  ;;  %v797_v62 = vadd.f32 %v766_v60, %v740_v55 }
 0x354   :  { %v1649_v63 = vmul.f32 -1.442695, %v796_v61  ;;  %v1650_v0 = vmul.f32 -1.442695, %v797_v62 }
 0x356   :  { %1887 = vpow2.f32 %v1649_v63 }
 0x357   :  { %1889 = vpow2.f32 %v1650_v0 }
 0x358   :  { %v779_v5 = vpop.f32.mrf.mxu2  ;;  %v792_v10 = vpop.f32.mrf.mxu3 }
 0x359   :  { %v799_v11 = vadd.f32 %v792_v10, %v742_v4  ;;  %v755_v13 = vpop.f32.mrf.mxu0  ;;  %v768_v14 = vpop.f32.mrf.mxu1  ;;  %v798_v27 = vadd.f32 %v779_v5, %v741_v29 }
 0x35b   :  { %v1651_v26 = vmul.f32 -1.442695, %v799_v11 }
 0x35c   :  { %v1888_v30 = vpop.eup %1887 }
 0x35d   :  { %v1890_v40 = vpop.eup %1889  ;;  %v803_v18 = vadd.f32 1.0, %v1888_v30  ;;  %1891 = vpow2.f32 %v1651_v26 }
 0x35e   :  { %v822_v35 = vadd.f32 1.0, %v1890_v40 }
 0x35f   :  { %1893 = vrcp.f32 %v803_v18  ;;  %v815_v55 = vand.u32 2147483648, %v803_v18  ;;  %v813_v61 = vand.u32 2147483647, %v803_v18  ;;  %vm809_vm2 = vweird.f32 %v803_v18 }
 0x360   :  { %1895 = vrcp.f32 %v822_v35  ;;  %v781_v48 = vpop.f32.mrf.mxu2  ;;  %v794_v43 = vpop.f32.mrf.mxu3  ;;  %v834_v56 = vand.u32 2147483648, %v822_v35  ;;  %v832_v63 = vand.u32 2147483647, %v822_v35  ;;  %vm828_vm3 = vweird.f32 %v822_v35 }
 0x361   :  { %v816_v4 = vor.u32 1.1754944e-38, %v815_v55  ;;  %vm814_vm6 = vcmp.eq.f32.partialorder %v813_v61, 8.507059e+37 }
 0x362   :  { %v835_v11 = vor.u32 1.1754944e-38, %v834_v56  ;;  %vm833_vm7 = vcmp.eq.f32.partialorder %v832_v63, 8.507059e+37 }
 0x363   :  { %v1892_v50 = vpop.eup %1891 }
 0x364   :  { %v842_v31 = vadd.f32 1.0, %v1892_v50 }
 0x365   :  { %v1894_v51 = vpop.eup %1893 }
 0x366   :  { %v1896_v22 = vpop.eup %1895  ;;  %v805_v47 = vmul.f32 %v1894_v51, %v803_v18  ;;  %1897 = vrcp.f32 %v842_v31  ;;  %vm810_vm0 = vweird.f32 %v1894_v51  ;;  %vm848_vm9 = vweird.f32 %v842_v31 }
 0x367   :  { %v824_v52 = vmul.f32 %v1896_v22, %v822_v35  ;;  %1899 = vtanh.f32 %v798_v27  ;;  %vm829_vm1 = vweird.f32 %v1896_v22  ;;  %vm811_vm4 = vmor %vm809_vm2, %vm810_vm0  ;;  %v854_v27 = vand.u32 2147483648, %v842_v31 }
 0x368   :  { %v806_v15 = vsub.f32 1.0, %v805_v47  ;;  %vm830_vm5 = vmor %vm828_vm3, %vm829_vm1 }
 0x369   :  { %v825_v49 = vsub.f32 1.0, %v824_v52  ;;  %v855_v52 = vor.u32 1.1754944e-38, %v854_v27 }
 0x36a   :  { %v807_v60 = vmul.f32 %v1894_v51, %v806_v15 }
 0x36b   :  { %v826_v62 = vmul.f32 %v1896_v22, %v825_v49 }
 0x36c   :  { %v1898_v59 = vpop.eup %1897  ;;  %v808_v0 = vadd.f32 %v1894_v51, %v807_v60 }
 0x36d   :  { %v827_v5 = vadd.f32 %v1896_v22, %v826_v62  ;;  %v844_v10 = vmul.f32 %v1898_v59, %v842_v31  ;;  %v1900_v14 = vpop.eup %1899  ;;  %vm849_vm8 = vweird.f32 %v1898_v59 }
 0x36e   :  { %v812_v13 = vsel %vm811_vm4, %v1894_v51, %v808_v0  ;;  %v852_v51 = vand.u32 2147483647, %v842_v31  ;;  %vm850_vm10 = vmor %vm848_vm9, %vm849_vm8 }
 0x36f   :  { %v817_v26 = vsel %vm814_vm6, %v816_v4, %v812_v13  ;;  %v831_v30 = vsel %vm830_vm5, %v1896_v22, %v827_v5  ;;  %v845_v40 = vsub.f32 1.0, %v844_v10 }
 0x370   :  { %v836_v48 = vsel %vm833_vm7, %v835_v11, %v831_v30  ;;  %v859_v43 = vmul.f32 %v1900_v14, %v817_v26  ;;  %vm853_vm11 = vcmp.eq.f32.partialorder %v852_v51, 8.507059e+37 }
 0x371   :  { %v858_v29 = vmul.f32 %v836_v48, %v2481_v23  ;;  %v846_v50 = vmul.f32 %v1898_v59, %v845_v40 }
 0x373   :  { %v2523_v18 = vadd.f32 %v859_v43, %v858_v29  ;;  %v847_v35 = vadd.f32 %v1898_v59, %v846_v50 }
 0x375   :  { %1901 = vtanh.f32 %v2523_v18  ;;  %v851_v47 = vsel %vm850_vm10, %v1898_v59, %v847_v35 }
 0x376   :  { %v856_v15 = vsel %vm853_vm11, %v855_v52, %v851_v47 }
 0x37b   :  { %v1902_v22 = vpop.eup %1901 }
 0x37c   :  { %v862_v49 = vmul.f32 %v1902_v22, %v856_v15 }
 0x37e   :  { %v870_v55 = vpack.c.bf16 %v862_v49, %v862_v49 }
 0x380   :  { %879 = vmatmul.bf16.vlgmr.msrb.gmra.mxu0 %v870_v55  ;;  %892 = vmatmul.bf16.vlgmr.msrb.gmra.mxu1 %v870_v55 }
 0x381   :  { %905 = vmatmul.bf16.vlgmr.msrb.gmra.mxu2 %v870_v55  ;;  %918 = vmatmul.bf16.vlgmr.msrb.gmra.mxu3 %v870_v55 }
 0x382   :  { %1125 = vmatpush.bf16.msrb.mxu0 %v2006_v3  ;;  %1138 = vmatpush.bf16.msrb.mxu1 %v2017_v7  ;;  %v1652_v3 = vld [vmem:[%s2670_s0 + $0x50] sm:$0xff] }
 0x383   :  { %1151 = vmatpush.bf16.msrb.mxu2 %v2057_v21  ;;  %1164 = vmatpush.bf16.msrb.mxu3 %v2019_v8  ;;  %v866_v7 = vunpack.c.l.bf16 %v1652_v3  ;;  %v867_v8 = vunpack.c.h.bf16 %v1652_v3 }
 0x386   :  { %1126 = vmatpush.bf16.msrb.mxu0 %v2031_v12  ;;  %1139 = vmatpush.bf16.msrb.mxu1 %v2044_v16 }
 0x387   :  { %1152 = vmatpush.bf16.msrb.mxu2 %v2096_v34  ;;  %1165 = vmatpush.bf16.msrb.mxu3 %v2046_v17 }
 0x38a   :  { %1127 = vmatpush.bf16.msrb.mxu0 %v2079_v28  ;;  %1140 = vmatpush.bf16.msrb.mxu1 %v2092_v32  ;;  %v1653_v28 = vld [vmem:[%s2670_s0 + $0x58] sm:$0xff] }
 0x38b   :  { %1153 = vmatpush.bf16.msrb.mxu2 %v2120_v42  ;;  %1166 = vmatpush.bf16.msrb.mxu3 %v2094_v33  ;;  %v869_v34 = vunpack.c.h.bf16 %v1653_v28 }
 0x38e   :  { %1128 = vmatpush.bf16.msrb.mxu0 %v2118_v41  ;;  %1141 = vmatpush.bf16.msrb.mxu1 %v2130_v45 }
 0x38f   :  { %1154 = vmatpush.bf16.msrb.mxu2 %v2156_v54  ;;  %1167 = vmatpush.bf16.msrb.mxu3 %v2132_v46 }
 0x392   :  { %1129 = vmatpush.bf16.msrb.mxu0 %v2154_v53  ;;  %1142 = vmatpush.bf16.msrb.mxu1 %v2166_v57 }
 0x393   :  { %1155 = vmatpush.bf16.msrb.mxu2 %v2192_v2  ;;  %1168 = vmatpush.bf16.msrb.mxu3 %v2168_v58 }
 0x396   :  { %1130 = vmatpush.bf16.msrb.mxu0 %v2190_v1  ;;  %1143 = vmatpush.bf16.msrb.mxu1 %v2202_v6 }
 0x397   :  { %1156 = vmatpush.bf16.msrb.mxu2 %v2228_v20  ;;  %1169 = vmatpush.bf16.msrb.mxu3 %v2204_v9 }
 0x39a   :  { %1131 = vmatpush.bf16.msrb.mxu0 %v2226_v19  ;;  %1144 = vmatpush.bf16.msrb.mxu1 %v2238_v24  ;;  %v868_v19 = vunpack.c.l.bf16 %v1653_v28  ;;  %v1658_v28 = vld [vmem:[%s2670_s0 + $0x68] sm:$0xff] }
 0x39b   :  { %1157 = vmatpush.bf16.msrb.mxu2 %v2264_v37  ;;  %1170 = vmatpush.bf16.msrb.mxu3 %v2240_v25 }
 0x39e   :  { %1132 = vmatpush.bf16.msrb.mxu0 %v2262_v36  ;;  %1145 = vmatpush.bf16.msrb.mxu1 %v2268_v38 }
 0x39f   :  { %1158 = vmatpush.bf16.msrb.mxu2 %v2282_v44  ;;  %1171 = vmatpush.bf16.msrb.mxu3 %v2270_v39 }
 0x3fd   :  { %v880_v12 = vpop.f32.mrf.mxu0  ;;  %v893_v16 = vpop.f32.mrf.mxu1 }
 0x3fe   :  { %v923_v17 = vadd.f32 %v880_v12, %v866_v7  ;;  %v924_v21 = vadd.f32 %v893_v16, %v867_v8 }
 0x400   :  { %v1654_v32 = vmul.f32 -1.442695, %v923_v17  ;;  %v1655_v33 = vmul.f32 -1.442695, %v924_v21 }
 0x402   :  { %1903 = vpow2.f32 %v1654_v32 }
 0x403   :  { %1905 = vpow2.f32 %v1655_v33 }
 0x404   :  { %v906_v41 = vpop.f32.mrf.mxu2  ;;  %v919_v42 = vpop.f32.mrf.mxu3 }
 0x405   :  { %v926_v45 = vadd.f32 %v919_v42, %v869_v34  ;;  %v882_v46 = vpop.f32.mrf.mxu0  ;;  %v895_v53 = vpop.f32.mrf.mxu1  ;;  %v925_v36 = vadd.f32 %v906_v41, %v868_v19  ;;  %v996_v34 = vunpack.c.h.bf16 %v1658_v28  ;;  %v995_v19 = vunpack.c.l.bf16 %v1658_v28  ;;  %v1798_v28 = vld [vmem:[%s2672_s2 + $0x18] sm:$0xff] }
 0x407   :  { %v1656_v54 = vmul.f32 -1.442695, %v926_v45 }
 0x408   :  { %v1904_v57 = vpop.eup %1903 }
 0x409   :  { %v1906_v58 = vpop.eup %1905  ;;  %v930_v1 = vadd.f32 1.0, %v1904_v57  ;;  %1907 = vpow2.f32 %v1656_v54 }
 0x40a   :  { %v949_v2 = vadd.f32 1.0, %v1906_v58 }
 0x40b   :  { %1909 = vrcp.f32 %v930_v1  ;;  %v942_v31 = vand.u32 2147483648, %v930_v1  ;;  %v940_v61 = vand.u32 2147483647, %v930_v1  ;;  %vm936_vm14 = vweird.f32 %v930_v1 }
 0x40c   :  { %1911 = vrcp.f32 %v949_v2  ;;  %v908_v6 = vpop.f32.mrf.mxu2  ;;  %v921_v9 = vpop.f32.mrf.mxu3  ;;  %v961_v56 = vand.u32 2147483648, %v949_v2  ;;  %v959_v63 = vand.u32 2147483647, %v949_v2  ;;  %vm955_vm15 = vweird.f32 %v949_v2 }
 0x40d   :  { %v943_v4 = vor.u32 1.1754944e-38, %v942_v31  ;;  %vm941_vm2 = vcmp.eq.f32.partialorder %v940_v61, 8.507059e+37 }
 0x40e   :  { %v962_v11 = vor.u32 1.1754944e-38, %v961_v56  ;;  %vm960_vm3 = vcmp.eq.f32.partialorder %v959_v63, 8.507059e+37 }
 0x40f   :  { %v1908_v20 = vpop.eup %1907 }
 0x410   :  { %v969_v24 = vadd.f32 1.0, %v1908_v20 }
 0x411   :  { %v1910_v25 = vpop.eup %1909 }
 0x412   :  { %v1912_v37 = vpop.eup %1911  ;;  %v932_v38 = vmul.f32 %v1910_v25, %v930_v1  ;;  %1913 = vrcp.f32 %v969_v24  ;;  %vm937_vm12 = vweird.f32 %v1910_v25  ;;  %v981_v51 = vand.u32 2147483648, %v969_v24 }
 0x413   :  { %v951_v39 = vmul.f32 %v1912_v37, %v949_v2  ;;  %1915 = vtanh.f32 %v925_v36  ;;  %vm956_vm13 = vweird.f32 %v1912_v37  ;;  %vm938_vm0 = vmor %vm936_vm14, %vm937_vm12  ;;  %vm975_vm5 = vweird.f32 %v969_v24 }
 0x414   :  { %v933_v44 = vsub.f32 1.0, %v932_v38  ;;  %vm957_vm1 = vmor %vm955_vm15, %vm956_vm13  ;;  %v979_v47 = vand.u32 2147483647, %v969_v24  ;;  %v982_v22 = vor.u32 1.1754944e-38, %v981_v51 }
 0x415   :  { %v952_v23 = vsub.f32 1.0, %v951_v39 }
 0x416   :  { %v934_v60 = vmul.f32 %v1910_v25, %v933_v44  ;;  %vm980_vm7 = vcmp.eq.f32.partialorder %v979_v47, 8.507059e+37 }
 0x417   :  { %v953_v62 = vmul.f32 %v1912_v37, %v952_v23 }
 0x418   :  { %v1914_v59 = vpop.eup %1913  ;;  %v935_v0 = vadd.f32 %v1910_v25, %v934_v60 }
 0x419   :  { %v954_v5 = vadd.f32 %v1912_v37, %v953_v62  ;;  %v971_v10 = vmul.f32 %v1914_v59, %v969_v24  ;;  %v1916_v14 = vpop.eup %1915  ;;  %vm976_vm4 = vweird.f32 %v1914_v59 }
 0x41a   :  { %v939_v13 = vsel %vm938_vm0, %v1910_v25, %v935_v0  ;;  %vm977_vm6 = vmor %vm975_vm5, %vm976_vm4 }
 0x41b   :  { %v944_v26 = vsel %vm941_vm2, %v943_v4, %v939_v13  ;;  %v958_v30 = vsel %vm957_vm1, %v1912_v37, %v954_v5  ;;  %v972_v40 = vsub.f32 1.0, %v971_v10 }
 0x41c   :  { %v963_v48 = vsel %vm960_vm3, %v962_v11, %v958_v30  ;;  %v986_v43 = vmul.f32 %v1916_v14, %v944_v26 }
 0x41d   :  { %v985_v29 = vmul.f32 %v963_v48, %v2523_v18  ;;  %v973_v50 = vmul.f32 %v1914_v59, %v972_v40  ;;  %v1657_v18 = vld [vmem:[%s2670_s0 + $0x60] sm:$0xff] }
 0x41e   :  { %v993_v7 = vunpack.c.l.bf16 %v1657_v18  ;;  %v994_v8 = vunpack.c.h.bf16 %v1657_v18 }
 0x41f   :  { %v2565_v35 = vadd.f32 %v986_v43, %v985_v29  ;;  %v974_v27 = vadd.f32 %v1914_v59, %v973_v50 }
 0x421   :  { %1917 = vtanh.f32 %v2565_v35  ;;  %v978_v52 = vsel %vm977_vm6, %v1914_v59, %v974_v27 }
 0x422   :  { %v983_v49 = vsel %vm980_vm7, %v982_v22, %v978_v52 }
 0x427   :  { %v1918_v15 = vpop.eup %1917 }
 0x428   :  { %v989_v55 = vmul.f32 %v1918_v15, %v983_v49 }
 0x42a   :  { %v997_v3 = vpack.c.bf16 %v989_v55, %v989_v55 }
 0x42c   :  { %1006 = vmatmul.bf16.vlgmr.msra.gmra.mxu0 %v997_v3  ;;  %1019 = vmatmul.bf16.vlgmr.msra.gmra.mxu1 %v997_v3 }
 0x42d   :  { %1032 = vmatmul.bf16.vlgmr.msra.gmra.mxu2 %v997_v3  ;;  %1045 = vmatmul.bf16.vlgmr.msra.gmra.mxu3 %v997_v3 }
 0x4a9   :  { %v1007_v12 = vpop.f32.mrf.mxu0  ;;  %v1020_v16 = vpop.f32.mrf.mxu1 }
 0x4aa   :  { %v1050_v17 = vadd.f32 %v1007_v12, %v993_v7  ;;  %v1051_v21 = vadd.f32 %v1020_v16, %v994_v8  ;;  %v1801_v7 = vld [vmem:[%s2672_s2 + $0x30] sm:$0xff]  ;;  %v1800_v8 = vld [vmem:[%s2672_s2 + $0x28] sm:$0xff]  ;;  %v1799_v16 = vld [vmem:[%s2672_s2 + $0x20] sm:$0xff] }
 0x4ab   :  { %v1662_v12 = vld [vmem:[%s2670_s0 + $0x70] sm:$0xff] }
 0x4ac   :  { %v1659_v32 = vmul.f32 -1.442695, %v1050_v17  ;;  %v1660_v33 = vmul.f32 -1.442695, %v1051_v21  ;;  %v1120_v17 = vunpack.c.l.bf16 %v1662_v12  ;;  %v1121_v21 = vunpack.c.h.bf16 %v1662_v12 }
 0x4ae   :  { %1919 = vpow2.f32 %v1659_v32 }
 0x4af   :  { %1921 = vpow2.f32 %v1660_v33 }
 0x4b0   :  { %v1033_v41 = vpop.f32.mrf.mxu2  ;;  %v1046_v42 = vpop.f32.mrf.mxu3 }
 0x4b1   :  { %v1053_v45 = vadd.f32 %v1046_v42, %v996_v34  ;;  %v1009_v46 = vpop.f32.mrf.mxu0  ;;  %v1022_v53 = vpop.f32.mrf.mxu1  ;;  %v1052_v36 = vadd.f32 %v1033_v41, %v995_v19  ;;  %v1663_v42 = vld [vmem:[%s2670_s0 + $0x78] sm:$0xff]  ;;  %v1795_v19 = vld [vmem:[%s2672_s2] sm:$0xff] }
 0x4b3   :  { %v1661_v54 = vmul.f32 -1.442695, %v1053_v45  ;;  %v1797_v45 = vld [vmem:[%s2672_s2 + $0x10] sm:$0xff] }
 0x4b4   :  { %v1920_v57 = vpop.eup %1919 }
 0x4b5   :  { %v1922_v58 = vpop.eup %1921  ;;  %v1057_v1 = vadd.f32 1.0, %v1920_v57  ;;  %1923 = vpow2.f32 %v1661_v54  ;;  %v1123_v54 = vunpack.c.h.bf16 %v1663_v42  ;;  %v1796_v57 = vld [vmem:[%s2672_s2 + $0x8] sm:$0xff] }
 0x4b6   :  { %v1076_v2 = vadd.f32 1.0, %v1922_v58 }
 0x4b7   :  { %1925 = vrcp.f32 %v1057_v1  ;;  %v1069_v31 = vand.u32 2147483648, %v1057_v1  ;;  %v1067_v61 = vand.u32 2147483647, %v1057_v1  ;;  %vm1063_vm10 = vweird.f32 %v1057_v1 }
 0x4b8   :  { %1927 = vrcp.f32 %v1076_v2  ;;  %v1035_v6 = vpop.f32.mrf.mxu2  ;;  %v1048_v9 = vpop.f32.mrf.mxu3  ;;  %v1088_v56 = vand.u32 2147483648, %v1076_v2  ;;  %v1086_v63 = vand.u32 2147483647, %v1076_v2  ;;  %vm1082_vm11 = vweird.f32 %v1076_v2 }
 0x4b9   :  { %v1070_v4 = vor.u32 1.1754944e-38, %v1069_v31  ;;  %vm1068_vm14 = vcmp.eq.f32.partialorder %v1067_v61, 8.507059e+37  ;;  %v1809_v31 = vld [vmem:[%s2673_s4 + $0x30] sm:$0xff] }
 0x4ba   :  { %v1089_v11 = vor.u32 1.1754944e-38, %v1088_v56  ;;  %vm1087_vm15 = vcmp.eq.f32.partialorder %v1086_v63, 8.507059e+37 }
 0x4bb   :  { %v1924_v20 = vpop.eup %1923 }
 0x4bc   :  { %v1096_v24 = vadd.f32 1.0, %v1924_v20 }
 0x4bd   :  { %v1926_v25 = vpop.eup %1925 }
 0x4be   :  { %v1928_v37 = vpop.eup %1927  ;;  %v1059_v38 = vmul.f32 %v1926_v25, %v1057_v1  ;;  %1929 = vrcp.f32 %v1096_v24  ;;  %vm1064_vm8 = vweird.f32 %v1926_v25  ;;  %v1108_v47 = vand.u32 2147483648, %v1096_v24 }
 0x4bf   :  { %v1078_v39 = vmul.f32 %v1928_v37, %v1076_v2  ;;  %1931 = vtanh.f32 %v1052_v36  ;;  %vm1083_vm9 = vweird.f32 %v1928_v37  ;;  %vm1065_vm12 = vmor %vm1063_vm10, %vm1064_vm8  ;;  %vm1102_vm1 = vweird.f32 %v1096_v24 }
 0x4c0   :  { %v1060_v44 = vsub.f32 1.0, %v1059_v38  ;;  %vm1084_vm13 = vmor %vm1082_vm11, %vm1083_vm9  ;;  %v1106_v52 = vand.u32 2147483647, %v1096_v24  ;;  %v1109_v15 = vor.u32 1.1754944e-38, %v1108_v47 }
 0x4c1   :  { %v1079_v23 = vsub.f32 1.0, %v1078_v39 }
 0x4c2   :  { %v1061_v60 = vmul.f32 %v1926_v25, %v1060_v44  ;;  %vm1107_vm3 = vcmp.eq.f32.partialorder %v1106_v52, 8.507059e+37  ;;  %v1810_v44 = vld [vmem:[%s2673_s4 + $0x38] sm:$0xff] }
 0x4c3   :  { %v1080_v62 = vmul.f32 %v1928_v37, %v1079_v23  ;;  %v1122_v23 = vunpack.c.l.bf16 %v1663_v42  ;;  %1400 = vmatpush.bf16.msra.mxu1 %v1810_v44 }
 0x4c4   :  { %v1930_v59 = vpop.eup %1929  ;;  %v1062_v0 = vadd.f32 %v1926_v25, %v1061_v60 }
 0x4c5   :  { %v1081_v5 = vadd.f32 %v1928_v37, %v1080_v62  ;;  %v1098_v10 = vmul.f32 %v1930_v59, %v1096_v24  ;;  %v1932_v14 = vpop.eup %1931  ;;  %vm1103_vm0 = vweird.f32 %v1930_v59 }
 0x4c6   :  { %v1066_v13 = vsel %vm1065_vm12, %v1926_v25, %v1062_v0  ;;  %vm1104_vm2 = vmor %vm1102_vm1, %vm1103_vm0  ;;  %v1808_v0 = vld [vmem:[%s2673_s4 + $0x28] sm:$0xff] }
 0x4c7   :  { %v1071_v26 = vsel %vm1068_vm14, %v1070_v4, %v1066_v13  ;;  %v1085_v30 = vsel %vm1084_vm13, %v1928_v37, %v1081_v5  ;;  %v1099_v40 = vsub.f32 1.0, %v1098_v10  ;;  %1401 = vmatpush.bf16.msra.mxu1 %v1809_v31 }
 0x4c8   :  { %v1090_v48 = vsel %vm1087_vm15, %v1089_v11, %v1085_v30  ;;  %v1113_v43 = vmul.f32 %v1932_v14, %v1071_v26  ;;  %v1807_v30 = vld [vmem:[%s2673_s4 + $0x20] sm:$0xff] }
 0x4c9   :  { %v1112_v29 = vmul.f32 %v1090_v48, %v2565_v35  ;;  %v1100_v50 = vmul.f32 %v1930_v59, %v1099_v40  ;;  %v1802_v35 = vld [vmem:[%s2672_s2 + $0x38] sm:$0xff] }
 0x4ca   :  { %1318 = vmatpush.bf16.msra.mxu0 %v1802_v35 }
 0x4cb   :  { %v2575_v27 = vadd.f32 %v1113_v43, %v1112_v29  ;;  %v1101_v51 = vadd.f32 %v1930_v59, %v1100_v50  ;;  %1402 = vmatpush.bf16.msra.mxu1 %v1808_v0 }
 0x4cd   :  { %1933 = vtanh.f32 %v2575_v27  ;;  %v1105_v22 = vsel %vm1104_vm2, %v1930_v59, %v1101_v51 }
 0x4ce   :  { %v1110_v55 = vsel %vm1107_vm3, %v1109_v15, %v1105_v22  ;;  %1319 = vmatpush.bf16.msra.mxu0 %v1801_v7  ;;  %v1806_v15 = vld [vmem:[%s2673_s4 + $0x18] sm:$0xff] }
 0x4cf   :  { %1403 = vmatpush.bf16.msra.mxu1 %v1807_v30 }
 0x4d2   :  { %1320 = vmatpush.bf16.msra.mxu0 %v1800_v8 }
 0x4d3   :  { %v1934_v49 = vpop.eup %1933  ;;  %1404 = vmatpush.bf16.msra.mxu1 %v1806_v15 }
 0x4d4   :  { %v1116_v3 = vmul.f32 %v1934_v49, %v1110_v55 }
 0x4d6   :  { %v1124_v18 = vpack.c.bf16 %v1116_v3, %v1116_v3  ;;  %1321 = vmatpush.bf16.msra.mxu0 %v1799_v16  ;;  %v1805_v16 = vld [vmem:[%s2673_s4 + $0x10] sm:$0xff] }
 0x4d7   :  { %1405 = vmatpush.bf16.msra.mxu1 %v1805_v16 }
 0x4d8   :  { %1133 = vmatmul.bf16.vlgmr.msrb.gmra.mxu0 %v1124_v18  ;;  %1146 = vmatmul.bf16.vlgmr.msrb.gmra.mxu1 %v1124_v18 }
 0x4d9   :  { %1159 = vmatmul.bf16.vlgmr.msrb.gmra.mxu2 %v1124_v18  ;;  %1172 = vmatmul.bf16.vlgmr.msrb.gmra.mxu3 %v1124_v18 }
 0x4da   :  { %1322 = vmatpush.bf16.msra.mxu0 %v1798_v28 }
 0x4de   :  { %1323 = vmatpush.bf16.msra.mxu0 %v1797_v45 }
 0x4e2   :  { %1324 = vmatpush.bf16.msra.mxu0 %v1796_v57  ;;  %v1817_v57 = vld [vmem:[%s2675_s6 + $0x30] sm:$0xff] }
 0x4e6   :  { %1325 = vmatpush.bf16.msra.mxu0 %v1795_v19 }
 0x555   :  { %v1134_v32 = vpop.f32.mrf.mxu0  ;;  %v1147_v33 = vpop.f32.mrf.mxu1 }
 0x556   :  { %v1177_v34 = vadd.f32 %v1134_v32, %v1120_v17  ;;  %v1178_v41 = vadd.f32 %v1147_v33, %v1121_v21  ;;  %v1804_v33 = vld [vmem:[%s2673_s4 + $0x8] sm:$0xff] }
 0x557   :  { %1406 = vmatpush.bf16.msra.mxu1 %v1804_v33 }
 0x558   :  { %v1664_v46 = vmul.f32 -1.442695, %v1177_v34  ;;  %v1665_v53 = vmul.f32 -1.442695, %v1178_v41 }
 0x55a   :  { %1935 = vpow2.f32 %v1664_v46 }
 0x55b   :  { %1937 = vpow2.f32 %v1665_v53  ;;  %v1803_v53 = vld [vmem:[%s2673_s4] sm:$0xff] }
 0x55c   :  { %v1160_v58 = vpop.f32.mrf.mxu2  ;;  %v1173_v1 = vpop.f32.mrf.mxu3  ;;  %1407 = vmatpush.bf16.msra.mxu1 %v1803_v53 }
 0x55d   :  { %v1180_v2 = vadd.f32 %v1173_v1, %v1123_v54  ;;  %v1136_v6 = vpop.f32.mrf.mxu0  ;;  %v1149_v9 = vpop.f32.mrf.mxu1  ;;  %v1179_v62 = vadd.f32 %v1160_v58, %v1122_v23  ;;  %v1818_v54 = vld [vmem:[%s2675_s6 + $0x38] sm:$0xff]  ;;  %v1816_v58 = vld [vmem:[%s2675_s6 + $0x28] sm:$0xff]  ;;  %v1815_v1 = vld [vmem:[%s2675_s6 + $0x20] sm:$0xff] }
 0x55e   :  { %1483 = vmatpush.bf16.msra.mxu2 %v1818_v54  ;;  %v1813_v6 = vld [vmem:[%s2675_s6 + $0x10] sm:$0xff]  ;;  %v1820_v9 = vld [vmem:[%s2671_s3] ss:$0 sm:$0xff] }
 0x55f   :  { %v1666_v20 = vmul.f32 -1.442695, %v1180_v2  ;;  %v1814_v2 = vld [vmem:[%s2675_s6 + $0x18] sm:$0xff] }
 0x560   :  { %v1936_v24 = vpop.eup %1935 }
 0x561   :  { %v1938_v25 = vpop.eup %1937  ;;  %v1184_v36 = vadd.f32 1.0, %v1936_v24  ;;  %1939 = vpow2.f32 %v1666_v20 }
 0x562   :  { %v1203_v37 = vadd.f32 1.0, %v1938_v25  ;;  %1484 = vmatpush.bf16.msra.mxu2 %v1817_v57 }
 0x563   :  { %1941 = vrcp.f32 %v1184_v36  ;;  %v1196_v11 = vand.u32 2147483648, %v1184_v36  ;;  %v1194_v26 = vand.u32 2147483647, %v1184_v36  ;;  %vm1190_vm6 = vweird.f32 %v1184_v36 }
 0x564   :  { %1943 = vrcp.f32 %v1203_v37  ;;  %v1162_v38 = vpop.f32.mrf.mxu2  ;;  %v1175_v39 = vpop.f32.mrf.mxu3  ;;  %v1215_v13 = vand.u32 2147483648, %v1203_v37  ;;  %v1213_v48 = vand.u32 2147483647, %v1203_v37  ;;  %vm1209_vm7 = vweird.f32 %v1203_v37 }
 0x565   :  { %v1197_v50 = vor.u32 1.1754944e-38, %v1196_v11  ;;  %vm1195_vm10 = vcmp.eq.f32.partialorder %v1194_v26, 8.507059e+37  ;;  %v1821_v38 = vld [vmem:[%s2674_s5] ss:$0 sm:$0xff] }
 0x566   :  { %v1216_v52 = vor.u32 1.1754944e-38, %v1215_v13  ;;  %vm1214_vm11 = vcmp.eq.f32.partialorder %v1213_v48, 8.507059e+37  ;;  %1485 = vmatpush.bf16.msra.mxu2 %v1816_v58 }
 0x567   :  { %v1940_v56 = vpop.eup %1939 }
 0x568   :  { %v1223_v60 = vadd.f32 1.0, %v1940_v56 }
 0x569   :  { %v1942_v61 = vpop.eup %1941 }
 0x56a   :  { %v1944_v63 = vpop.eup %1943  ;;  %v1186_v59 = vmul.f32 %v1942_v61, %v1184_v36  ;;  %1945 = vrcp.f32 %v1223_v60  ;;  %vm1191_vm4 = vweird.f32 %v1942_v61  ;;  %v1235_v28 = vand.u32 2147483648, %v1223_v60  ;;  %1486 = vmatpush.bf16.msra.mxu2 %v1815_v1  ;;  %v1812_v36 = vld [vmem:[%s2675_s6 + $0x8] sm:$0xff] }
 0x56b   :  { %v1205_v4 = vmul.f32 %v1944_v63, %v1203_v37  ;;  %1947 = vtanh.f32 %v1179_v62  ;;  %vm1210_vm5 = vweird.f32 %v1944_v63  ;;  %vm1192_vm8 = vmor %vm1190_vm6, %vm1191_vm4  ;;  %vm1229_vm13 = vweird.f32 %v1223_v60  ;;  %v1811_v37 = vld [vmem:[%s2675_s6] sm:$0xff] }
 0x56c   :  { %v1187_v5 = vsub.f32 1.0, %v1186_v59  ;;  %vm1211_vm9 = vmor %vm1209_vm7, %vm1210_vm5  ;;  %v1233_v32 = vand.u32 2147483647, %v1223_v60  ;;  %v1236_v34 = vor.u32 1.1754944e-38, %v1235_v28 }
 0x56d   :  { %v1206_v10 = vsub.f32 1.0, %v1205_v4 }
 0x56e   :  { %v1188_v14 = vmul.f32 %v1942_v61, %v1187_v5  ;;  %vm1234_vm15 = vcmp.eq.f32.partialorder %v1233_v32, 8.507059e+37  ;;  %1487 = vmatpush.bf16.msra.mxu2 %v1814_v2 }
 0x56f   :  { %v1207_v40 = vmul.f32 %v1944_v63, %v1206_v10 }
 0x570   :  { %v1946_v43 = vpop.eup %1945  ;;  %v1189_v29 = vadd.f32 %v1942_v61, %v1188_v14 }
 0x571   :  { %v1208_v51 = vadd.f32 %v1944_v63, %v1207_v40  ;;  %v1225_v47 = vmul.f32 %v1946_v43, %v1223_v60  ;;  %v1948_v49 = vpop.eup %1947  ;;  %vm1230_vm12 = vweird.f32 %v1946_v43  ;;  %v1822_v60 = vld [vmem:[%s2676_s7] ss:$0 sm:$0xff] }
 0x572   :  { %v1193_v22 = vsel %vm1192_vm8, %v1942_v61, %v1189_v29  ;;  %vm1231_vm14 = vmor %vm1229_vm13, %vm1230_vm12  ;;  %1488 = vmatpush.bf16.msra.mxu2 %v1813_v6 }
 0x573   :  { %v1198_v55 = vsel %vm1195_vm10, %v1197_v50, %v1193_v22  ;;  %v1212_v3 = vsel %vm1211_vm9, %v1944_v63, %v1208_v51  ;;  %v1226_v18 = vsub.f32 1.0, %v1225_v47 }
 0x574   :  { %v1217_v35 = vsel %vm1214_vm11, %v1216_v52, %v1212_v3  ;;  %v1240_v7 = vmul.f32 %v1948_v49, %v1198_v55 }
 0x575   :  { %v1239_v8 = vmul.f32 %v1217_v35, %v2575_v27  ;;  %v1227_v12 = vmul.f32 %v1946_v43, %v1226_v18 }
 0x576   :  { %1489 = vmatpush.bf16.msra.mxu2 %v1812_v36 }
 0x577   :  { %v1241_v17 = vadd.f32 %v1240_v7, %v1239_v8  ;;  %v1228_v21 = vadd.f32 %v1946_v43, %v1227_v12 }
 0x579   :  { %1949 = vtanh.f32 %v1241_v17  ;;  %v1232_v27 = vsel %vm1231_vm14, %v1946_v43, %v1228_v21 }
 0x57a   :  { %v1237_v42 = vsel %vm1234_vm15, %v1236_v34, %v1232_v27  ;;  %1490 = vmatpush.bf16.msra.mxu2 %v1811_v37 }
 0x57f   :  { %v1950_v41 = vpop.eup %1949 }
 0x580   :  { %v1243_v45 = vmul.f32 %v1950_v41, %v1237_v42 }
 0x582   :  { %v1249_v46 = vpack.c.bf16 %v1243_v45, %v1243_v45 }
 0x584   :  { %1326 = vmatmul.bf16.vlgmr.msra.gmra.mxu0 %v1249_v46 }
 0x601   :  { %v1327_v19 = vpop.f32.mrf.mxu0 }
 0x602   :  { %v1328_v20 = vadd.f32 %v1820_v9, %v1327_v19 }
 0x604   :  { %v1331_v24 = vpack.c.bf16 %v1328_v20, %v1328_v20 }
 0x606   :  { %1408 = vmatmul.bf16.vlgmr.msra.gmra.mxu1 %v1331_v24 }
 0x609   :  { %v1329_v25 = vpop.f32.mrf.mxu0 }
 0x683   :  { %v1409_v39 = vpop.f32.mrf.mxu1 }
 0x684   :  { %v1410_v44 = vadd.f32 %v1821_v38, %v1409_v39 }
 0x686   :  { %v1413_v23 = vmax.f32 %v1410_v44, 0.0 }
 0x688   :  { %v1414_v31 = vpack.c.bf16 %v1413_v23, %v1413_v23 }
 0x68a   :  { %1491 = vmatmul.bf16.vlgmr.msra.gmra.mxu2 %v1414_v31 }
 0x68b   :  { %v1411_v56 = vpop.f32.mrf.mxu1 }
 0x70d   :  { %v1492_v61 = vpop.f32.mrf.mxu2 }
 0x70e   :  { %v1493_v62 = vadd.f32 %v1822_v60, %v1492_v61 }
 0x710   :  { %1496 = vst [vmem:[%s2677_s8] sm:$0xff] %v1493_v62 }
 0x715   :  { %v1494_v63 = vpop.f32.mrf.mxu2 }

</bundles_post_ra>
